<compile_context>
chip_gen: v7x
topology: tpu7x:2x2x1
jax: 0.10.0
libtpu: 0.0.40
codegen_flags: <defaults>
</compile_context>

<pallas_src>
import functools
import math

import jax
import jax.numpy as jnp
from jax import lax
from jax.experimental import pallas as pl
from jax.experimental.pallas import tpu as pltpu


PARAM_DTYPE = jnp.float32   # set to jnp.bfloat16 on v6e/v7x to halve operator bytes


def _round_up(x, m):
    return (x + m - 1) // m * m


# ---------------------------------------------------------------------------
# Layer math (used both to build the fused-kernel operators and as reference)
# ---------------------------------------------------------------------------
def _conv_fwd(x_nchw, w_oihw):
    """Conv2d(kernel=3, stride=2, padding=1), no bias."""
    return lax.conv_general_dilated(
        x_nchw, w_oihw, window_strides=(2, 2), padding=((1, 1), (1, 1)),
        dimension_numbers=("NCHW", "OIHW", "NCHW"),
        precision=lax.Precision.HIGHEST)


def _convT_fwd(x_nchw, w_iohw):
    """ConvTranspose2d(kernel=3, stride=2, padding=1, output_padding=1), no bias."""
    w = jnp.flip(w_iohw, axis=(2, 3)).transpose(1, 0, 2, 3)      # (in,out,k,k) -> OIHW
    return lax.conv_general_dilated(
        x_nchw, w, window_strides=(1, 1), padding=((1, 2), (1, 2)),
        lhs_dilation=(2, 2), dimension_numbers=("NCHW", "OIHW", "NCHW"),
        precision=lax.Precision.HIGHEST)


# ---------------------------------------------------------------------------
# One-time parameter prep: lower each conv layer to a dense linear operator
# (flattened NCHW in  x  flattened NCHW out) + expanded bias vector.
# All weight transforms are hoisted out of the per-call forward.
# ---------------------------------------------------------------------------
def prepare_params(p, image_hw, param_dtype=PARAM_DTYPE):
    H, W = image_hw
    layers = [
        (lambda x: _conv_fwd(x, p["enc1_w"]), p["enc1_b"]),
        (lambda x: _conv_fwd(x, p["enc2_w"]), p["enc2_b"]),
        (lambda x: _convT_fwd(x, p["dec1_w"]), p["dec1_b"]),
        (lambda x: _convT_fwd(x, p["dec2_w"]), p["dec2_b"]),
    ]

    shapes = [(1, H, W)]
    raw = []
    for apply_fn, b in layers:
        in_shape = shapes[-1]
        n_in = math.prod(in_shape)
        # Materialize the layer's Jacobian by applying it to a basis batch.
        basis = jnp.eye(n_in, dtype=jnp.float32).reshape((n_in,) + tuple(in_shape))
        out = apply_fn(basis)                               # (n_in, C_out, Ho, Wo)
        out_shape = out.shape[1:]
        m = out.reshape(n_in, math.prod(out_shape))         # y_flat = x_flat @ m
        bias = jnp.repeat(b.astype(jnp.float32), out_shape[1] * out_shape[2])
        raw.append((m, bias))
        shapes.append(out_shape)

    # Pad each layer width up to a multiple of 128.  For 16x16 inputs the
    # widths are 256/1024/128/1024/256 -> all pads are no-ops, so the per-call
    # hot path never sees padded lanes.  Padded columns produce relu(0)=0 and
    # the matching padded operator rows of the next layer are zero.
    widths = [math.prod(s) for s in shapes]
    pw = [_round_up(w, 128) for w in widths]
    ops = []
    for li, (m, bias) in enumerate(raw):
        k, n = m.shape
        kp, np_ = pw[li], pw[li + 1]
        m_pad = jnp.zeros((kp, np_), jnp.float32).at[:k, :n].set(m)
        b_pad = jnp.zeros((1, np_), jnp.float32).at[0, :n].set(bias)
        ops.append((m_pad.astype(param_dtype), b_pad))

    return {
        "ops": tuple(ops),
        "in_shape": shapes[0], "out_shape": shapes[-1],
        "in_width": widths[0], "out_width": widths[-1],
        "in_width_padded": pw[0], "out_width_padded": pw[-1],
    }


# ---------------------------------------------------------------------------
# Fused Pallas kernel: the entire 4-layer forward in one pallas_call.
# Activations stay in VMEM/vregs between layers; weights/biases use constant
# index_maps so they are fetched once and revisited across batch tiles.
# ---------------------------------------------------------------------------
def _aed_fused_kernel(x_ref, m1_ref, b1_ref, m2_ref, b2_ref, m3_ref, b3_ref,
                      m4_ref, b4_ref, o_ref):
    def layer(h, m_ref, b_ref, act):
        acc = jnp.dot(h.astype(m_ref.dtype), m_ref[...],
                      preferred_element_type=jnp.float32)      # MXU
        acc = acc + b_ref[...]                                 # (1, N) bcast over rows
        if act == "relu":
            return jnp.maximum(acc, 0.0)                       # VPU
        return jax.nn.sigmoid(acc)                             # EUP

    h = x_ref[...].astype(jnp.float32)
    h = layer(h, m1_ref, b1_ref, "relu")
    h = layer(h, m2_ref, b2_ref, "relu")
    h = layer(h, m3_ref, b3_ref, "relu")
    o_ref[...] = layer(h, m4_ref, b4_ref, "sigmoid").astype(o_ref.dtype)


def aed_femnist_forward(x_nchw, prep):
    B = x_nchw.shape[0]
    assert tuple(x_nchw.shape[1:]) == tuple(prep["in_shape"]), x_nchw.shape
    k1, k1p = prep["in_width"], prep["in_width_padded"]

    x2d = x_nchw.reshape(B, k1).astype(jnp.float32)
    if k1p != k1:                                              # no-op for 16x16
        x2d = jnp.pad(x2d, ((0, 0), (0, k1p - k1)))

    # Batch rows = GEMM M dim, tiled over one "parallel" grid axis (sharded
    # across TensorCores on multi-core parts).  Tiny batches -> single step.
    bm = min(256, _round_up(B, 8))
    bp = _round_up(B, bm)
    if bp != B:
        x2d = jnp.pad(x2d, ((0, bp - B), (0, 0)))

    (m1, b1), (m2, b2), (m3, b3), (m4, b4) = prep["ops"]
    n_out = prep["out_width_padded"]

    def const_spec(a):
        return pl.BlockSpec(a.shape, lambda i: (0, 0))

    out = pl.pallas_call(
        _aed_fused_kernel,
        out_shape=jax.ShapeDtypeStruct((bp, n_out), jnp.float32),
        grid=(bp // bm,),
        in_specs=[
            pl.BlockSpec((bm, k1p), lambda i: (i, 0)),
            const_spec(m1), const_spec(b1),
            const_spec(m2), const_spec(b2),
            const_spec(m3), const_spec(b3),
            const_spec(m4), const_spec(b4),
        ],
        out_specs=pl.BlockSpec((bm, n_out), lambda i: (i, 0)),
        compiler_params=pltpu.CompilerParams(
            dimension_semantics=("parallel",),
            vmem_limit_bytes=32 * 1024 * 1024),
    )(x2d, m1, b1, m2, b2, m3, b3, m4, b4)

    co, ho, wo = prep["out_shape"]
    return out[:B, :prep["out_width"]].reshape(B, co, ho, wo)


# ---------------------------------------------------------------------------
# Deterministic parameter init (PyTorch-like uniform) + pure-JAX reference
# ---------------------------------------------------------------------------
def init_params(key):
    ks = jax.random.split(key, 8)

    def u(k, shape, fan_in):
        bound = 1.0 / (fan_in ** 0.5)
        return jax.random.uniform(k, shape, jnp.float32, -bound, bound)

    return {
        # encoder: Conv2d(1,16,3,s2,p1), Conv2d(16,8,3,s2,p1)        OIHW
        "enc1_w": u(ks[0], (16, 1, 3, 3), 1 * 9),
        "enc1_b": u(ks[1], (16,), 1 * 9),
        "enc2_w": u(ks[2], (8, 16, 3, 3), 16 * 9),
        "enc2_b": u(ks[3], (8,), 16 * 9),
        # decoder: ConvTranspose2d weights in (in, out, kH, kW)
        "dec1_w": u(ks[4], (8, 16, 3, 3), 16 * 9),
        "dec1_b": u(ks[5], (16,), 16 * 9),
        "dec2_w": u(ks[6], (16, 1, 3, 3), 1 * 9),
        "dec2_b": u(ks[7], (1,), 1 * 9),
    }


def reference_forward(x, p):
    h = jax.nn.relu(_conv_fwd(x, p["enc1_w"]) + p["enc1_b"][None, :, None, None])
    h = jax.nn.relu(_conv_fwd(h, p["enc2_w"]) + p["enc2_b"][None, :, None, None])
    h = jax.nn.relu(_convT_fwd(h, p["dec1_w"]) + p["dec1_b"][None, :, None, None])
    return jax.nn.sigmoid(_convT_fwd(h, p["dec2_w"]) + p["dec2_b"][None, :, None, None])


if __name__ == "__main__":
    key = jax.random.PRNGKey(0)
    k_x, k_p = jax.random.split(key)

    H = W = 16                                     # small FEMNIST-like input
    x = jax.random.normal(k_x, (2, 1, H, W), jnp.float32)   # NCHW
    params = init_params(k_p)

    prep = prepare_params(params, (H, W))          # one-time weight lowering
    forward = jax.jit(functools.partial(aed_femnist_forward, prep=prep))

    out = jax.block_until_ready(forward(x))
    assert out.shape == (2, 1, H, W), out.shape

    ref = jax.block_until_ready(reference_forward(x, params))
    max_err = float(jnp.abs(out - ref).max())
    assert jnp.allclose(out, ref, atol=1e-4, rtol=1e-4), max_err

    print("KERNEL_OK")
</pallas_src>

<mosaic_0001>
module attributes {stable_mosaic.version = 11 : i64} {
  func.func @_aed_fused_kernel(%arg0: i32, %arg1: memref<8x256xf32, #tpu.memory_space<vmem>>, %arg2: memref<256x1024xf32, #tpu.memory_space<vmem>>, %arg3: memref<1x1024xf32, #tpu.memory_space<vmem>>, %arg4: memref<1024x128xf32, #tpu.memory_space<vmem>>, %arg5: memref<1x128xf32, #tpu.memory_space<vmem>>, %arg6: memref<128x1024xf32, #tpu.memory_space<vmem>>, %arg7: memref<1x1024xf32, #tpu.memory_space<vmem>>, %arg8: memref<1024x256xf32, #tpu.memory_space<vmem>>, %arg9: memref<1x256xf32, #tpu.memory_space<vmem>>, %arg10: memref<8x256xf32, #tpu.memory_space<vmem>>) attributes {dimension_semantics = [#tpu.dimension_semantics<parallel>], iteration_bounds = array<i64: 1>, scalar_prefetch = 0 : i64, scratch_operands = 0 : i64, tpu.core_type = #tpu.core_type<tc>, window_params = [{transform_indices = @transform_0, window_bounds = array<i64: 8, 256>}, {pipeline_mode = #tpu.pipeline_mode<synchronous>, transform_indices = @transform_1, window_bounds = array<i64: 256, 1024>}, {pipeline_mode = #tpu.pipeline_mode<synchronous>, transform_indices = @transform_2, window_bounds = array<i64: 1, 1024>}, {pipeline_mode = #tpu.pipeline_mode<synchronous>, transform_indices = @transform_3, window_bounds = array<i64: 1024, 128>}, {pipeline_mode = #tpu.pipeline_mode<synchronous>, transform_indices = @transform_4, window_bounds = array<i64: 1, 128>}, {pipeline_mode = #tpu.pipeline_mode<synchronous>, transform_indices = @transform_5, window_bounds = array<i64: 128, 1024>}, {pipeline_mode = #tpu.pipeline_mode<synchronous>, transform_indices = @transform_6, window_bounds = array<i64: 1, 1024>}, {pipeline_mode = #tpu.pipeline_mode<synchronous>, transform_indices = @transform_7, window_bounds = array<i64: 1024, 256>}, {pipeline_mode = #tpu.pipeline_mode<synchronous>, transform_indices = @transform_8, window_bounds = array<i64: 1, 256>}, {transform_indices = @transform_9, window_bounds = array<i64: 8, 256>}]} {
    %c0 = arith.constant 0 : index
    %c0_0 = arith.constant 0 : index
    %0 = vector.load %arg1[%c0, %c0_0] : memref<8x256xf32, #tpu.memory_space<vmem>>, vector<8x256xf32>
    %c0_1 = arith.constant 0 : index
    %c0_2 = arith.constant 0 : index
    %1 = vector.load %arg2[%c0_1, %c0_2] : memref<256x1024xf32, #tpu.memory_space<vmem>>, vector<256x1024xf32>
    %cst = arith.constant dense<0.000000e+00> : vector<8x1024xf32>
    %2 = tpu.matmul %0, %1, %cst {dimension_numbers = #tpu.dot_dimension_numbers<[1], [0], [0], [1], [0, 0, 1, 1], [], []>} : vector<8x256xf32>, vector<256x1024xf32>, vector<8x1024xf32> -> vector<8x1024xf32>
    %c0_3 = arith.constant 0 : index
    %c0_4 = arith.constant 0 : index
    %3 = vector.load %arg3[%c0_3, %c0_4] : memref<1x1024xf32, #tpu.memory_space<vmem>>, vector<1x1024xf32>
    %4 = vector.broadcast %3 : vector<1x1024xf32> to vector<8x1024xf32>
    %5 = arith.addf %2, %4 : vector<8x1024xf32>
    %cst_5 = arith.constant 0.000000e+00 : f32
    %6 = vector.broadcast %cst_5 : f32 to vector<8x1024xf32>
    %7 = arith.maximumf %5, %6 : vector<8x1024xf32>
    %c0_6 = arith.constant 0 : index
    %c0_7 = arith.constant 0 : index
    %8 = vector.load %arg4[%c0_6, %c0_7] : memref<1024x128xf32, #tpu.memory_space<vmem>>, vector<1024x128xf32>
    %cst_8 = arith.constant dense<0.000000e+00> : vector<8x128xf32>
    %9 = tpu.matmul %7, %8, %cst_8 {dimension_numbers = #tpu.dot_dimension_numbers<[1], [0], [0], [1], [0, 0, 1, 1], [], []>} : vector<8x1024xf32>, vector<1024x128xf32>, vector<8x128xf32> -> vector<8x128xf32>
    %c0_9 = arith.constant 0 : index
    %c0_10 = arith.constant 0 : index
    %10 = vector.load %arg5[%c0_9, %c0_10] : memref<1x128xf32, #tpu.memory_space<vmem>>, vector<1x128xf32>
    %11 = vector.broadcast %10 : vector<1x128xf32> to vector<8x128xf32>
    %12 = arith.addf %9, %11 : vector<8x128xf32>
    %cst_11 = arith.constant 0.000000e+00 : f32
    %13 = vector.broadcast %cst_11 : f32 to vector<8x128xf32>
    %14 = arith.maximumf %12, %13 : vector<8x128xf32>
    %c0_12 = arith.constant 0 : index
    %c0_13 = arith.constant 0 : index
    %15 = vector.load %arg6[%c0_12, %c0_13] : memref<128x1024xf32, #tpu.memory_space<vmem>>, vector<128x1024xf32>
    %cst_14 = arith.constant dense<0.000000e+00> : vector<8x1024xf32>
    %16 = tpu.matmul %14, %15, %cst_14 {dimension_numbers = #tpu.dot_dimension_numbers<[1], [0], [0], [1], [0, 0, 1, 1], [], []>} : vector<8x128xf32>, vector<128x1024xf32>, vector<8x1024xf32> -> vector<8x1024xf32>
    %c0_15 = arith.constant 0 : index
    %c0_16 = arith.constant 0 : index
    %17 = vector.load %arg7[%c0_15, %c0_16] : memref<1x1024xf32, #tpu.memory_space<vmem>>, vector<1x1024xf32>
    %18 = vector.broadcast %17 : vector<1x1024xf32> to vector<8x1024xf32>
    %19 = arith.addf %16, %18 : vector<8x1024xf32>
    %cst_17 = arith.constant 0.000000e+00 : f32
    %20 = vector.broadcast %cst_17 : f32 to vector<8x1024xf32>
    %21 = arith.maximumf %19, %20 : vector<8x1024xf32>
    %c0_18 = arith.constant 0 : index
    %c0_19 = arith.constant 0 : index
    %22 = vector.load %arg8[%c0_18, %c0_19] : memref<1024x256xf32, #tpu.memory_space<vmem>>, vector<1024x256xf32>
    %cst_20 = arith.constant dense<0.000000e+00> : vector<8x256xf32>
    %23 = tpu.matmul %21, %22, %cst_20 {dimension_numbers = #tpu.dot_dimension_numbers<[1], [0], [0], [1], [0, 0, 1, 1], [], []>} : vector<8x1024xf32>, vector<1024x256xf32>, vector<8x256xf32> -> vector<8x256xf32>
    %c0_21 = arith.constant 0 : index
    %c0_22 = arith.constant 0 : index
    %24 = vector.load %arg9[%c0_21, %c0_22] : memref<1x256xf32, #tpu.memory_space<vmem>>, vector<1x256xf32>
    %25 = vector.broadcast %24 : vector<1x256xf32> to vector<8x256xf32>
    %26 = arith.addf %23, %25 : vector<8x256xf32>
    %27 = arith.negf %26 : vector<8x256xf32>
    %28 = math.exp %27 : vector<8x256xf32>
    %cst_23 = arith.constant 1.000000e+00 : f32
    %29 = vector.broadcast %cst_23 : f32 to vector<8x256xf32>
    %30 = arith.addf %29, %28 : vector<8x256xf32>
    %31 = arith.divf %29, %30 : vector<8x256xf32>
    %c0_24 = arith.constant 0 : index
    %c0_25 = arith.constant 0 : index
    %32 = vector.load %arg10[%c0_24, %c0_25] : memref<8x256xf32, #tpu.memory_space<vmem>>, vector<8x256xf32>
    tpu.vector_store %arg10[%c0_24, %c0_25], %31 {strides = array<i32>} : memref<8x256xf32, #tpu.memory_space<vmem>>, vector<8x256xf32>,
    return
  }
  func.func @transform_0(%arg0: i32) -> (i32, i32) {
    %c0_i32 = arith.constant 0 : i32
    %c0_i32_0 = arith.constant 0 : i32
    return %arg0, %c0_i32 : i32, i32
  }
  func.func @transform_1(%arg0: i32) -> (i32, i32) {
    %c0_i32 = arith.constant 0 : i32
    %c0_i32_0 = arith.constant 0 : i32
    %c0_i32_1 = arith.constant 0 : i32
    return %c0_i32, %c0_i32_0 : i32, i32
  }
  func.func @transform_2(%arg0: i32) -> (i32, i32) {
    %c0_i32 = arith.constant 0 : i32
    %c0_i32_0 = arith.constant 0 : i32
    %c0_i32_1 = arith.constant 0 : i32
    return %c0_i32, %c0_i32_0 : i32, i32
  }
  func.func @transform_3(%arg0: i32) -> (i32, i32) {
    %c0_i32 = arith.constant 0 : i32
    %c0_i32_0 = arith.constant 0 : i32
    %c0_i32_1 = arith.constant 0 : i32
    return %c0_i32, %c0_i32_0 : i32, i32
  }
  func.func @transform_4(%arg0: i32) -> (i32, i32) {
    %c0_i32 = arith.constant 0 : i32
    %c0_i32_0 = arith.constant 0 : i32
    %c0_i32_1 = arith.constant 0 : i32
    return %c0_i32, %c0_i32_0 : i32, i32
  }
  func.func @transform_5(%arg0: i32) -> (i32, i32) {
    %c0_i32 = arith.constant 0 : i32
    %c0_i32_0 = arith.constant 0 : i32
    %c0_i32_1 = arith.constant 0 : i32
    return %c0_i32, %c0_i32_0 : i32, i32
  }
  func.func @transform_6(%arg0: i32) -> (i32, i32) {
    %c0_i32 = arith.constant 0 : i32
    %c0_i32_0 = arith.constant 0 : i32
    %c0_i32_1 = arith.constant 0 : i32
    return %c0_i32, %c0_i32_0 : i32, i32
  }
  func.func @transform_7(%arg0: i32) -> (i32, i32) {
    %c0_i32 = arith.constant 0 : i32
    %c0_i32_0 = arith.constant 0 : i32
    %c0_i32_1 = arith.constant 0 : i32
    return %c0_i32, %c0_i32_0 : i32, i32
  }
  func.func @transform_8(%arg0: i32) -> (i32, i32) {
    %c0_i32 = arith.constant 0 : i32
    %c0_i32_0 = arith.constant 0 : i32
    %c0_i32_1 = arith.constant 0 : i32
    return %c0_i32, %c0_i32_0 : i32, i32
  }
  func.func @transform_9(%arg0: i32) -> (i32, i32) {
    %c0_i32 = arith.constant 0 : i32
    %c0_i32_0 = arith.constant 0 : i32
    return %arg0, %c0_i32 : i32, i32
  }
}

</mosaic_0001>

<bundles_post_ra>
// kernel: aed_femnist_forward.1
= control target key start
LH: loop header
LB: loop body
LE: loop exit
PB: predicated region body
PF: predicated region fallthrough
CT: control target
= control target key end

     0   :  { %14 = vsyncpa [#allocation3], 0  ;;  %s3402_s0 = inlined_call_operand.vmem [shape: f32[8,256], index: 0, kind: input, shape index: {}]   ;;  %s3403_s1 = inlined_call_operand.hbm [shape: f32[256,1024], index: 1, kind: input, shape index: {}]   ;;  %s3404_s2 = inlined_call_operand.vmem [shape: f32[1,1024], index: 2, kind: input, shape index: {}]   ;;  %s3405_s3 = inlined_call_operand.hbm [shape: f32[1024,128], index: 3, kind: input, shape index: {}]   ;;  %s3406_s4 = inlined_call_operand.vmem [shape: f32[1,128], index: 4, kind: input, shape index: {}]   ;;  %s3407_s5 = inlined_call_operand.hbm [shape: f32[128,1024], index: 5, kind: input, shape index: {}]   ;;  %s3408_s6 = inlined_call_operand.vmem [shape: f32[1,1024], index: 6, kind: input, shape index: {}]   ;;  %s3409_s7 = inlined_call_operand.hbm [shape: f32[1024,256], index: 7, kind: input, shape index: {}]   ;;  %s3410_s8 = inlined_call_operand.vmem [shape: f32[1,256], index: 8, kind: input, shape index: {}]   ;;  %s3411_s9 = inlined_call_operand.vmem [shape: f32[8,256], index: 9, kind: output, shape index: {}]  }
   0x1   :  { %15 = vsyncpa [#allocation5], 0 }
   0x2   :  { %16 = vsyncpa [#allocation8], 0  ;;  %s3162_s30 = smov [#allocation4]   ;;  %s3068_s13 = scalar_lea.hbm %s3405_s3, 16384 }
   0x3   :  { %s38_s10 = sshll.u32 %s3162_s30, 4  ;;  %p3069_p0 = scmp.ne.s32.totalorder %s3405_s3, %s3068_s13  ;;  %s39_s10 = int_to_ptr.vmem [resolvable:$true] %s38_s10 }
   0x4   :  { %p3072_p1 = scmp.lt.u32.totalorder %s3068_s13, %s3405_s3 }
   0x6   :  { %p3074_p2 = pnand %p3072_p1, %p3069_p0 }
   0x8   :  { %3077 = shalt.err (!%p3074_p2)
}
   0x9   :  { %s3078_s18 = scalar_lea.vmem %s39_s10, 16384  ;;  %p3083_p4 = scmp.lt.s32.totalorder %s39_s10, %s39_s10 }
   0xa   :  { %p3079_p3 = scmp.ne.s32.totalorder %s39_s10, %s3078_s18  ;;  %p3084_p5 = scmp.lt.s32.totalorder %s3078_s18, %s3078_s18 }
   0xc   :  { %p3085_p6 = por %p3084_p5, %p3083_p4 }
   0xe   :  { %p3086_p7 = pnand %p3085_p6, %p3079_p3 }
  0x10   :  { %3089 = shalt.err (!%p3086_p7)
}
  0x11   :  { %s3163_s19 = smov 128   ;;  %s3164_s20 = smov 8  }
  0x12   :  { %44 = dma.hbm_to_vmem [thread:$0]  %s3405_s3, 16384, %s39_s10, [#allocation5], %s3163_s19, %s3163_s19, %s3164_s20  }
  0x13   :  { %s3165_s23 = smov [#allocation2]   ;;  %s3090_s27 = scalar_lea.hbm %s3403_s1, 32768 }
  0x14   :  { %s24_s24 = sshll.u32 %s3165_s23, 4  ;;  %p3091_p8 = scmp.ne.s32.totalorder %s3403_s1, %s3090_s27  ;;  %s25_s24 = int_to_ptr.vmem [resolvable:$true] %s24_s24 }
  0x15   :  { %p3094_p9 = scmp.lt.u32.totalorder %s3090_s27, %s3403_s1 }
  0x17   :  { %p3096_p10 = pnand %p3094_p9, %p3091_p8 }
  0x19   :  { %3099 = shalt.err (!%p3096_p10)
}
  0x1a   :  { %s3100_s12 = scalar_lea.vmem %s25_s24, 32768  ;;  %p3105_p12 = scmp.lt.s32.totalorder %s25_s24, %s25_s24 }
  0x1b   :  { %p3101_p11 = scmp.ne.s32.totalorder %s25_s24, %s3100_s12  ;;  %p3106_p13 = scmp.lt.s32.totalorder %s3100_s12, %s3100_s12 }
  0x1d   :  { %p3107_p0 = por %p3106_p13, %p3105_p12 }
  0x1f   :  { %p3108_p1 = pnand %p3107_p0, %p3101_p11 }
  0x21   :  { %3111 = shalt.err (!%p3108_p1)
}
  0x22   :  { %s3166_s3 = smov 1024   ;;  %s3167_s10 = smov 64  }
  0x23   :  { %30 = dma.hbm_to_vmem [thread:$0]  %s3403_s1, 32768, %s25_s24, [#allocation3], %s3166_s3, %s3166_s3, %s3167_s10  }
  0x24   :  { %s3168_s15 = smov [#allocation6]   ;;  %s3169_s17 = smov [#allocation7]  }
  0x25   :  { %s52_s16 = sshll.u32 %s3168_s15, 4  ;;  %s66_s18 = sshll.u32 %s3169_s17, 4  ;;  %s53_s16 = int_to_ptr.vmem [resolvable:$true] %s52_s16  ;;  %s3247_s18 = int_to_ptr.vmem [resolvable:$true] %s66_s18 }
  0x26   :  { %s3112_s21 = scalar_lea.hbm %s3407_s5, 16384 }
  0x27   :  { %p3113_p2 = scmp.ne.s32.totalorder %s3407_s5, %s3112_s21  ;;  %p3116_p3 = scmp.lt.u32.totalorder %s3112_s21, %s3407_s5 }
  0x29   :  { %p3118_p4 = pnand %p3116_p3, %p3113_p2 }
  0x2b   :  { %3121 = shalt.err (!%p3118_p4)
}
  0x2c   :  { %s3122_s1 = scalar_lea.vmem %s53_s16, 16384  ;;  %p3127_p6 = scmp.lt.s32.totalorder %s53_s16, %s53_s16 }
  0x2d   :  { %p3123_p5 = scmp.ne.s32.totalorder %s53_s16, %s3122_s1  ;;  %p3128_p7 = scmp.lt.s32.totalorder %s3122_s1, %s3122_s1 }
  0x2f   :  { %p3129_p8 = por %p3128_p7, %p3127_p6 }
  0x31   :  { %p3130_p9 = pnand %p3129_p8, %p3123_p5 }
  0x33   :  { %3133 = shalt.err (!%p3130_p9)
}
  0x34   :  { %58 = dma.hbm_to_vmem [thread:$0]  %s3407_s5, 16384, %s53_s16, [#allocation5], %s3166_s3, %s3166_s3, %s3167_s10  }
  0x35   :  { %s3134_s30 = scalar_lea.hbm %s3409_s7, 32768 }
  0x36   :  { %p3135_p10 = scmp.ne.s32.totalorder %s3409_s7, %s3134_s30  ;;  %p3138_p11 = scmp.lt.u32.totalorder %s3134_s30, %s3409_s7 }
  0x38   :  { %p3140_p12 = pnand %p3138_p11, %p3135_p10 }
  0x3a   :  { %3143 = shalt.err (!%p3140_p12)
}
  0x3b   :  { %s3144_s15 = scalar_lea.vmem %s3247_s18, 32768  ;;  %p3149_p0 = scmp.lt.s32.totalorder %s3247_s18, %s3247_s18 }
  0x3c   :  { %p3145_p13 = scmp.ne.s32.totalorder %s3247_s18, %s3144_s15  ;;  %p3150_p1 = scmp.lt.s32.totalorder %s3144_s15, %s3144_s15 }
  0x3e   :  { %p3151_p2 = por %p3150_p1, %p3149_p0 }
  0x40   :  { %p3152_p3 = pnand %p3151_p2, %p3145_p13 }
  0x42   :  { %3155 = shalt.err (!%p3152_p3)
}
  0x43   :  { %s3170_s5 = smov 256   ;;  %s3171_s3 = smov 16  }
  0x44   :  { %72 = dma.hbm_to_vmem [thread:$0]  %s3409_s7, 32768, %s3247_s18, [#allocation8], %s3170_s5, %s3170_s5, %s3171_s3  }
  0x45   :  { %3156 = dma.done.wait [#allocation3], 32768  }
  0x46   :  { %3157 = vsyncadd [#allocation3], 4294934528 }
  0x47   :  { %3158 = dma.done.wait [#allocation5], 32768  }
  0x48   :  { %3159 = vsyncadd [#allocation5], 4294934528 }
  0x49   :  { %3160 = dma.done.wait [#allocation8], 32768  }
  0x4a   :  { %3161 = vsyncadd [#allocation8], 4294934528  ;;  %v90_v0 = vld [vmem:[#allocation2 + $0x8] sm:$0xff]  ;;  %v89_v2 = vld [vmem:[#allocation2] sm:$0xff] }
  0x4b   :  { %v98_v1 = vld [vmem:[#allocation2 + $0x48] sm:$0xff]  ;;  %v97_v4 = vld [vmem:[#allocation2 + $0x40] sm:$0xff] }
  0x4c   :  { %v2273_v3 = vpack.c.bf16 %v98_v1, %v90_v0  ;;  %v106_v5 = vld [vmem:[#allocation2 + $0x88] sm:$0xff]  ;;  %v2275_v7 = vpack.c.bf16 %v97_v4, %v89_v2  ;;  %v105_v9 = vld [vmem:[#allocation2 + $0x80] sm:$0xff] }
  0x4d   :  { %v114_v6 = vld [vmem:[#allocation2 + $0xc8] sm:$0xff]  ;;  %v113_v10 = vld [vmem:[#allocation2 + $0xc0] sm:$0xff] }
  0x4e   :  { %v2277_v8 = vpack.c.bf16 %v114_v6, %v106_v5  ;;  %v122_v11 = vld [vmem:[#allocation2 + $0x108] sm:$0xff]  ;;  %2274 = vmatprep.subr.bf16.mxu1 %v2273_v3  ;;  %v2279_v13 = vpack.c.bf16 %v113_v10, %v105_v9  ;;  %v121_v15 = vld [vmem:[#allocation2 + $0x100] sm:$0xff] }
  0x4f   :  { %v130_v12 = vld [vmem:[#allocation2 + $0x148] sm:$0xff]  ;;  %2276 = vmatpush1.bf16.msra.mxu1 %v2275_v7  ;;  %v129_v16 = vld [vmem:[#allocation2 + $0x140] sm:$0xff] }
  0x50   :  { %2278 = vmatprep.subr.bf16.mxu1 %v2277_v8  ;;  %v2281_v14 = vpack.c.bf16 %v130_v12, %v122_v11  ;;  %v138_v17 = vld [vmem:[#allocation2 + $0x188] sm:$0xff]  ;;  %v2283_v19 = vpack.c.bf16 %v129_v16, %v121_v15  ;;  %v137_v21 = vld [vmem:[#allocation2 + $0x180] sm:$0xff] }
  0x51   :  { %v146_v18 = vld [vmem:[#allocation2 + $0x1c8] sm:$0xff]  ;;  %v145_v22 = vld [vmem:[#allocation2 + $0x1c0] sm:$0xff] }
  0x52   :  { %v2285_v20 = vpack.c.bf16 %v146_v18, %v138_v17  ;;  %v154_v23 = vld [vmem:[#allocation2 + $0x208] sm:$0xff]  ;;  %v2287_v25 = vpack.c.bf16 %v145_v22, %v137_v21  ;;  %v153_v27 = vld [vmem:[#allocation2 + $0x200] sm:$0xff] }
  0x53   :  { %2280 = vmatpush1.bf16.msra.mxu1 %v2279_v13  ;;  %v162_v24 = vld [vmem:[#allocation2 + $0x248] sm:$0xff]  ;;  %v161_v28 = vld [vmem:[#allocation2 + $0x240] sm:$0xff] }
  0x54   :  { %2282 = vmatprep.subr.bf16.mxu1 %v2281_v14  ;;  %v2289_v26 = vpack.c.bf16 %v162_v24, %v154_v23  ;;  %v170_v29 = vld [vmem:[#allocation2 + $0x288] sm:$0xff]  ;;  %v2291_v31 = vpack.c.bf16 %v161_v28, %v153_v27  ;;  %v169_v33 = vld [vmem:[#allocation2 + $0x280] sm:$0xff] }
  0x55   :  { %v178_v30 = vld [vmem:[#allocation2 + $0x2c8] sm:$0xff]  ;;  %v177_v34 = vld [vmem:[#allocation2 + $0x2c0] sm:$0xff] }
  0x56   :  { %v2293_v32 = vpack.c.bf16 %v178_v30, %v170_v29  ;;  %v186_v35 = vld [vmem:[#allocation2 + $0x308] sm:$0xff]  ;;  %v2295_v37 = vpack.c.bf16 %v177_v34, %v169_v33  ;;  %v185_v39 = vld [vmem:[#allocation2 + $0x300] sm:$0xff]  ;;  %v100_v33 = vld [vmem:[#allocation2 + $0x58] sm:$0xff] }
  0x57   :  { %2284 = vmatpush1.bf16.msra.mxu1 %v2283_v19  ;;  %v194_v36 = vld [vmem:[#allocation2 + $0x348] sm:$0xff]  ;;  %v193_v40 = vld [vmem:[#allocation2 + $0x340] sm:$0xff] }
  0x58   :  { %2286 = vmatprep.subr.bf16.mxu1 %v2285_v20  ;;  %v2297_v38 = vpack.c.bf16 %v194_v36, %v186_v35  ;;  %v3281_v41 = vld [vmem:[%s3402_s0 + $0x8] sm:$0xff]  ;;  %v2299_v44 = vpack.c.bf16 %v193_v40, %v185_v39  ;;  %v201_v46 = vld [vmem:[#allocation2 + $0x380] sm:$0xff]  ;;  %v91_v36 = vld [vmem:[#allocation2 + $0x10] sm:$0xff] }
  0x59   :  { %v202_v42 = vld [vmem:[#allocation2 + $0x388] sm:$0xff]  ;;  %451 = vmatprep.mubr.f32.mxu1 %v3281_v41  ;;  %v209_v47 = vld [vmem:[#allocation2 + $0x3c0] sm:$0xff]  ;;  %v116_v39 = vld [vmem:[#allocation2 + $0xd8] sm:$0xff] }
  0x5a   :  { %v210_v43 = vld [vmem:[#allocation2 + $0x3c8] sm:$0xff]  ;;  %v2303_v50 = vpack.c.bf16 %v209_v47, %v201_v46  ;;  %v217_v52 = vld [vmem:[#allocation2 + $0x400] sm:$0xff]  ;;  %v124_v46 = vld [vmem:[#allocation2 + $0x118] sm:$0xff] }
  0x5b   :  { %2288 = vmatpush1.bf16.msra.mxu1 %v2287_v25  ;;  %v2301_v45 = vpack.c.bf16 %v210_v43, %v202_v42  ;;  %v218_v48 = vld [vmem:[#allocation2 + $0x408] sm:$0xff]  ;;  %v225_v53 = vld [vmem:[#allocation2 + $0x440] sm:$0xff]  ;;  %v132_v47 = vld [vmem:[#allocation2 + $0x158] sm:$0xff] }
  0x5c   :  { %2290 = vmatprep.subr.bf16.mxu1 %v2289_v26  ;;  %v226_v49 = vld [vmem:[#allocation2 + $0x448] sm:$0xff]  ;;  %v2307_v56 = vpack.c.bf16 %v225_v53, %v217_v52  ;;  %v233_v58 = vld [vmem:[#allocation2 + $0x480] sm:$0xff]  ;;  %v140_v52 = vld [vmem:[#allocation2 + $0x198] sm:$0xff] }
  0x5d   :  { %v2305_v51 = vpack.c.bf16 %v226_v49, %v218_v48  ;;  %v234_v54 = vld [vmem:[#allocation2 + $0x488] sm:$0xff]  ;;  %v241_v59 = vld [vmem:[#allocation2 + $0x4c0] sm:$0xff]  ;;  %v2345_v49 = vpack.c.bf16 %v132_v47, %v124_v46  ;;  %v148_v53 = vld [vmem:[#allocation2 + $0x1d8] sm:$0xff] }
  0x5e   :  { %v242_v55 = vld [vmem:[#allocation2 + $0x4c8] sm:$0xff]  ;;  %v2311_v62 = vpack.c.bf16 %v241_v59, %v233_v58  ;;  %v249_v0 = vld [vmem:[#allocation2 + $0x500] sm:$0xff]  ;;  %v156_v58 = vld [vmem:[#allocation2 + $0x218] sm:$0xff] }
  0x5f   :  { %2292 = vmatpush1.bf16.msra.mxu1 %v2291_v31  ;;  %v2309_v57 = vpack.c.bf16 %v242_v55, %v234_v54  ;;  %v250_v60 = vld [vmem:[#allocation2 + $0x508] sm:$0xff]  ;;  %v257_v1 = vld [vmem:[#allocation2 + $0x540] sm:$0xff]  ;;  %v2349_v55 = vpack.c.bf16 %v148_v53, %v140_v52  ;;  %v164_v59 = vld [vmem:[#allocation2 + $0x258] sm:$0xff] }
  0x60   :  { %2294 = vmatprep.subr.bf16.mxu1 %v2293_v32  ;;  %v258_v61 = vld [vmem:[#allocation2 + $0x548] sm:$0xff]  ;;  %v2315_v4 = vpack.c.bf16 %v257_v1, %v249_v0  ;;  %v265_v6 = vld [vmem:[#allocation2 + $0x580] sm:$0xff]  ;;  %v92_v32 = vld [vmem:[#allocation2 + $0x18] sm:$0xff] }
  0x61   :  { %v2313_v63 = vpack.c.bf16 %v258_v61, %v250_v60  ;;  %v266_v2 = vld [vmem:[#allocation2 + $0x588] sm:$0xff]  ;;  %v273_v7 = vld [vmem:[#allocation2 + $0x5c0] sm:$0xff]  ;;  %v2337_v35 = vpack.c.bf16 %v100_v33, %v92_v32  ;;  %v2353_v61 = vpack.c.bf16 %v164_v59, %v156_v58  ;;  %v172_v0 = vld [vmem:[#allocation2 + $0x298] sm:$0xff] }
  0x62   :  { %v274_v3 = vld [vmem:[#allocation2 + $0x5c8] sm:$0xff]  ;;  %v2319_v10 = vpack.c.bf16 %v273_v7, %v265_v6  ;;  %v281_v12 = vld [vmem:[#allocation2 + $0x600] sm:$0xff]  ;;  %v180_v1 = vld [vmem:[#allocation2 + $0x2d8] sm:$0xff] }
  0x63   :  { %2296 = vmatpush1.bf16.msra.mxu1 %v2295_v37  ;;  %v2317_v5 = vpack.c.bf16 %v274_v3, %v266_v2  ;;  %v282_v8 = vld [vmem:[#allocation2 + $0x608] sm:$0xff]  ;;  %v289_v13 = vld [vmem:[#allocation2 + $0x640] sm:$0xff]  ;;  %v99_v37 = vld [vmem:[#allocation2 + $0x50] sm:$0xff]  ;;  %v2357_v3 = vpack.c.bf16 %v180_v1, %v172_v0 }
  0x64   :  { %2298 = vmatprep.subr.bf16.mxu1 %v2297_v38  ;;  %v290_v9 = vld [vmem:[#allocation2 + $0x648] sm:$0xff]  ;;  %v2323_v16 = vpack.c.bf16 %v289_v13, %v281_v12  ;;  %v297_v18 = vld [vmem:[#allocation2 + $0x680] sm:$0xff]  ;;  %v108_v38 = vld [vmem:[#allocation2 + $0x98] sm:$0xff]  ;;  %v2339_v42 = vpack.c.bf16 %v99_v37, %v91_v36 }
  0x65   :  { %v2321_v11 = vpack.c.bf16 %v290_v9, %v282_v8  ;;  %v298_v14 = vld [vmem:[#allocation2 + $0x688] sm:$0xff]  ;;  %v305_v19 = vld [vmem:[#allocation2 + $0x6c0] sm:$0xff]  ;;  %v2341_v43 = vpack.c.bf16 %v116_v39, %v108_v38  ;;  %v188_v6 = vld [vmem:[#allocation2 + $0x318] sm:$0xff] }
  0x66   :  { %v306_v15 = vld [vmem:[#allocation2 + $0x6c8] sm:$0xff]  ;;  %v2327_v22 = vpack.c.bf16 %v305_v19, %v297_v18  ;;  %v313_v24 = vld [vmem:[#allocation2 + $0x700] sm:$0xff]  ;;  %v196_v7 = vld [vmem:[#allocation2 + $0x358] sm:$0xff] }
  0x67   :  { %2300 = vmatpush1.bf16.msra.mxu1 %v2299_v44  ;;  %v2325_v17 = vpack.c.bf16 %v306_v15, %v298_v14  ;;  %v314_v20 = vld [vmem:[#allocation2 + $0x708] sm:$0xff]  ;;  %v321_v25 = vld [vmem:[#allocation2 + $0x740] sm:$0xff]  ;;  %v107_v44 = vld [vmem:[#allocation2 + $0x90] sm:$0xff]  ;;  %v2361_v9 = vpack.c.bf16 %v196_v7, %v188_v6 }
  0x68   :  { %2302 = vmatprep.subr.bf16.mxu1 %v2301_v45  ;;  %v322_v21 = vld [vmem:[#allocation2 + $0x748] sm:$0xff]  ;;  %v2331_v28 = vpack.c.bf16 %v321_v25, %v313_v24  ;;  %v329_v30 = vld [vmem:[#allocation2 + $0x780] sm:$0xff]  ;;  %v115_v45 = vld [vmem:[#allocation2 + $0xd0] sm:$0xff] }
  0x69   :  { %v2329_v23 = vpack.c.bf16 %v322_v21, %v314_v20  ;;  %v330_v26 = vld [vmem:[#allocation2 + $0x788] sm:$0xff]  ;;  %v337_v31 = vld [vmem:[#allocation2 + $0x7c0] sm:$0xff]  ;;  %v2343_v48 = vpack.c.bf16 %v115_v45, %v107_v44  ;;  %v204_v12 = vld [vmem:[#allocation2 + $0x398] sm:$0xff] }
  0x6a   :  { %v338_v27 = vld [vmem:[#allocation2 + $0x7c8] sm:$0xff]  ;;  %v2335_v34 = vpack.c.bf16 %v337_v31, %v329_v30  ;;  %v3287_v40 = vld [vmem:[%s3402_s0] sm:$0xff]  ;;  %v212_v13 = vld [vmem:[#allocation2 + $0x3d8] sm:$0xff] }
  0x6b   :  { %2304 = vmatpush1.bf16.msra.mxu1 %v2303_v50  ;;  %v2333_v29 = vpack.c.bf16 %v338_v27, %v330_v26  ;;  %v123_v50 = vld [vmem:[#allocation2 + $0x110] sm:$0xff]  ;;  %v2365_v15 = vpack.c.bf16 %v212_v13, %v204_v12  ;;  %v220_v18 = vld [vmem:[#allocation2 + $0x418] sm:$0xff]  ;;  %v695_v6 = vld [vmem:[#allocation4 + $0x80] sm:$0xff] }
  0x6c   :  { %2306 = vmatprep.subr.bf16.mxu1 %v2305_v51  ;;  %v131_v51 = vld [vmem:[#allocation2 + $0x150] sm:$0xff]  ;;  %v228_v19 = vld [vmem:[#allocation2 + $0x458] sm:$0xff]  ;;  %v696_v7 = vld [vmem:[#allocation4 + $0x88] sm:$0xff] }
  0x6d   :  { %v2347_v54 = vpack.c.bf16 %v131_v51, %v123_v50  ;;  %v2369_v21 = vpack.c.bf16 %v228_v19, %v220_v18  ;;  %v236_v24 = vld [vmem:[#allocation2 + $0x498] sm:$0xff]  ;;  %v697_v18 = vld [vmem:[#allocation4 + $0x90] sm:$0xff] }
  0x6e   :  { %v244_v25 = vld [vmem:[#allocation2 + $0x4d8] sm:$0xff] }
  0x6f   :  { %2308 = vmatpush1.bf16.msra.mxu1 %v2307_v56  ;;  %v139_v56 = vld [vmem:[#allocation2 + $0x190] sm:$0xff]  ;;  %v2373_v27 = vpack.c.bf16 %v244_v25, %v236_v24  ;;  %v252_v30 = vld [vmem:[#allocation2 + $0x518] sm:$0xff] }
  0x70   :  { %2310 = vmatprep.subr.bf16.mxu1 %v2309_v57  ;;  %v147_v57 = vld [vmem:[#allocation2 + $0x1d0] sm:$0xff]  ;;  %v260_v31 = vld [vmem:[#allocation2 + $0x558] sm:$0xff] }
  0x71   :  { %v2351_v60 = vpack.c.bf16 %v147_v57, %v139_v56  ;;  %v2377_v33 = vpack.c.bf16 %v260_v31, %v252_v30  ;;  %v268_v36 = vld [vmem:[#allocation2 + $0x598] sm:$0xff]  ;;  %v699_v30 = vld [vmem:[#allocation4 + $0xa0] sm:$0xff]  ;;  %v700_v31 = vld [vmem:[#allocation4 + $0xa8] sm:$0xff] }
  0x72   :  { %v276_v37 = vld [vmem:[#allocation2 + $0x5d8] sm:$0xff] }
  0x73   :  { %2312 = vmatpush1.bf16.msra.mxu1 %v2311_v62  ;;  %v155_v62 = vld [vmem:[#allocation2 + $0x210] sm:$0xff]  ;;  %v2381_v39 = vpack.c.bf16 %v276_v37, %v268_v36  ;;  %v284_v44 = vld [vmem:[#allocation2 + $0x618] sm:$0xff] }
  0x74   :  { %2314 = vmatprep.subr.bf16.mxu1 %v2313_v63  ;;  %v163_v63 = vld [vmem:[#allocation2 + $0x250] sm:$0xff]  ;;  %v292_v45 = vld [vmem:[#allocation2 + $0x658] sm:$0xff] }
  0x75   :  { %v2355_v2 = vpack.c.bf16 %v163_v63, %v155_v62  ;;  %v2385_v47 = vpack.c.bf16 %v292_v45, %v284_v44  ;;  %v300_v50 = vld [vmem:[#allocation2 + $0x698] sm:$0xff]  ;;  %v701_v36 = vld [vmem:[#allocation4 + $0xb0] sm:$0xff]  ;;  %v133_v45 = vld [vmem:[#allocation2 + $0x160] sm:$0xff] }
  0x76   :  { %v308_v51 = vld [vmem:[#allocation2 + $0x6d8] sm:$0xff] }
  0x77   :  { %2316 = vmatpush1.bf16.msra.mxu1 %v2315_v4  ;;  %v171_v4 = vld [vmem:[#allocation2 + $0x290] sm:$0xff]  ;;  %v2389_v53 = vpack.c.bf16 %v308_v51, %v300_v50  ;;  %v316_v56 = vld [vmem:[#allocation2 + $0x718] sm:$0xff]  ;;  %v150_v50 = vld [vmem:[#allocation2 + $0x1e8] sm:$0xff] }
  0x78   :  { %2318 = vmatprep.subr.bf16.mxu1 %v2317_v5  ;;  %v179_v5 = vld [vmem:[#allocation2 + $0x2d0] sm:$0xff]  ;;  %v324_v57 = vld [vmem:[#allocation2 + $0x758] sm:$0xff] }
  0x79   :  { %v2359_v8 = vpack.c.bf16 %v179_v5, %v171_v4  ;;  %v2393_v59 = vpack.c.bf16 %v324_v57, %v316_v56  ;;  %v332_v62 = vld [vmem:[#allocation2 + $0x798] sm:$0xff]  ;;  %v94_v4 = vld [vmem:[#allocation2 + $0x28] sm:$0xff]  ;;  %v705_v56 = vld [vmem:[#allocation4 + $0xd0] sm:$0xff] }
  0x7a   :  { %v340_v63 = vld [vmem:[#allocation2 + $0x7d8] sm:$0xff]  ;;  %v102_v5 = vld [vmem:[#allocation2 + $0x68] sm:$0xff] }
  0x7b   :  { %2320 = vmatpush1.bf16.msra.mxu1 %v2319_v10  ;;  %v187_v10 = vld [vmem:[#allocation2 + $0x310] sm:$0xff]  ;;  %v2397_v1 = vpack.c.bf16 %v340_v63, %v332_v62  ;;  %v2401_v13 = vpack.c.bf16 %v102_v5, %v94_v4  ;;  %v698_v19 = vld [vmem:[#allocation4 + $0x98] sm:$0xff]  ;;  %v166_v62 = vld [vmem:[#allocation2 + $0x268] sm:$0xff] }
  0x7c   :  { %2322 = vmatprep.subr.bf16.mxu1 %v2321_v11  ;;  %v195_v11 = vld [vmem:[#allocation2 + $0x350] sm:$0xff]  ;;  %v706_v57 = vld [vmem:[#allocation4 + $0xd8] sm:$0xff]  ;;  %v707_v4 = vld [vmem:[#allocation4 + $0xe0] sm:$0xff] }
  0x7d   :  { %v2363_v14 = vpack.c.bf16 %v195_v11, %v187_v10  ;;  %v680_v10 = vld [vmem:[#allocation4 + $0x8] sm:$0xff] }
  0x7e   :  { %v708_v5 = vld [vmem:[#allocation4 + $0xe8] sm:$0xff] }
  0x7f   :  { %2324 = vmatpush1.bf16.msra.mxu1 %v2323_v16  ;;  %v203_v16 = vld [vmem:[#allocation2 + $0x390] sm:$0xff] }
  0x80   :  { %2326 = vmatprep.subr.bf16.mxu1 %v2325_v17  ;;  %v211_v17 = vld [vmem:[#allocation2 + $0x3d0] sm:$0xff] }
  0x81   :  { %v2367_v20 = vpack.c.bf16 %v211_v17, %v203_v16  ;;  %v110_v16 = vld [vmem:[#allocation2 + $0xa8] sm:$0xff] }
  0x82   :  { %v118_v17 = vld [vmem:[#allocation2 + $0xe8] sm:$0xff] }
  0x83   :  { %2328 = vmatpush1.bf16.msra.mxu1 %v2327_v22  ;;  %v219_v22 = vld [vmem:[#allocation2 + $0x410] sm:$0xff]  ;;  %v2405_v25 = vpack.c.bf16 %v118_v17, %v110_v16  ;;  %v181_v16 = vld [vmem:[#allocation2 + $0x2e0] sm:$0xff]  ;;  %v190_v17 = vld [vmem:[#allocation2 + $0x328] sm:$0xff] }
  0x84   :  { %2330 = vmatprep.subr.bf16.mxu1 %v2329_v23  ;;  %v227_v23 = vld [vmem:[#allocation2 + $0x450] sm:$0xff] }
  0x85   :  { %v2371_v26 = vpack.c.bf16 %v227_v23, %v219_v22  ;;  %v682_v22 = vld [vmem:[#allocation4 + $0x18] sm:$0xff] }
  0x87   :  { %2332 = vmatpush1.bf16.msra.mxu1 %v2331_v28  ;;  %v235_v28 = vld [vmem:[#allocation2 + $0x490] sm:$0xff] }
  0x88   :  { %2334 = vmatprep.subr.bf16.mxu1 %v2333_v29  ;;  %v243_v29 = vld [vmem:[#allocation2 + $0x4d0] sm:$0xff] }
  0x89   :  { %v2375_v32 = vpack.c.bf16 %v243_v29, %v235_v28  ;;  %v126_v28 = vld [vmem:[#allocation2 + $0x128] sm:$0xff] }
  0x8a   :  { %v134_v29 = vld [vmem:[#allocation2 + $0x168] sm:$0xff] }
  0x8b   :  { %2336 = vmatpush1.bf16.msra.mxu1 %v2335_v34  ;;  %v251_v34 = vld [vmem:[#allocation2 + $0x510] sm:$0xff]  ;;  %v2409_v44 = vpack.c.bf16 %v134_v29, %v126_v28  ;;  %v710_v29 = vld [vmem:[#allocation4 + $0xf8] sm:$0xff] }
  0x8c   :  { %2338 = vmatprep.subr.bf16.mxu1 %v2337_v35  ;;  %v259_v35 = vld [vmem:[#allocation2 + $0x550] sm:$0xff] }
  0x8d   :  { %v2379_v38 = vpack.c.bf16 %v259_v35, %v251_v34  ;;  %v683_v34 = vld [vmem:[#allocation4 + $0x20] sm:$0xff]  ;;  %v684_v35 = vld [vmem:[#allocation4 + $0x28] sm:$0xff]  ;;  %v709_v28 = vld [vmem:[#allocation4 + $0xf0] sm:$0xff] }
  0x8e   :  { %452 = vmatmul.mubr.f32.vlgmr.msra.gmra.mrb[0].mxu1 %v3287_v40 }
  0x8f   :  { %2340 = vmatpush1.bf16.msra.mxu1 %v2339_v42  ;;  %522 = vmatprep.mubr.f32.mxu1 %v3281_v41  ;;  %v267_v42 = vld [vmem:[#allocation2 + $0x590] sm:$0xff] }
  0x90   :  { %2342 = vmatprep.subr.bf16.mxu1 %v2341_v43  ;;  %v275_v43 = vld [vmem:[#allocation2 + $0x5d0] sm:$0xff] }
  0x91   :  { %v2383_v46 = vpack.c.bf16 %v275_v43, %v267_v42  ;;  %v685_v42 = vld [vmem:[#allocation4 + $0x30] sm:$0xff]  ;;  %v686_v43 = vld [vmem:[#allocation4 + $0x38] sm:$0xff] }
  0x92   :  { %v2543_v51 = vpack.c.bf16 %v686_v43, %v685_v42 }
  0x93   :  { %2344 = vmatpush1.bf16.msra.mxu1 %v2343_v48  ;;  %v283_v48 = vld [vmem:[#allocation2 + $0x610] sm:$0xff] }
  0x94   :  { %2346 = vmatprep.subr.bf16.mxu1 %v2345_v49  ;;  %v291_v49 = vld [vmem:[#allocation2 + $0x650] sm:$0xff] }
  0x95   :  { %v2387_v52 = vpack.c.bf16 %v291_v49, %v283_v48  ;;  %v704_v48 = vld [vmem:[#allocation4 + $0xc8] sm:$0xff] }
  0x96   :  { %v142_v49 = vld [vmem:[#allocation2 + $0x1a8] sm:$0xff] }
  0x97   :  { %2348 = vmatpush1.bf16.msra.mxu1 %v2347_v54  ;;  %v299_v54 = vld [vmem:[#allocation2 + $0x690] sm:$0xff] }
  0x98   :  { %2350 = vmatprep.subr.bf16.mxu1 %v2349_v55  ;;  %v307_v55 = vld [vmem:[#allocation2 + $0x6d0] sm:$0xff] }
  0x99   :  { %v2391_v58 = vpack.c.bf16 %v307_v55, %v299_v54  ;;  %v688_v54 = vld [vmem:[#allocation4 + $0x48] sm:$0xff] }
  0x9b   :  { %2352 = vmatpush1.bf16.msra.mxu1 %v2351_v60  ;;  %v315_v60 = vld [vmem:[#allocation2 + $0x710] sm:$0xff] }
  0x9c   :  { %2354 = vmatprep.subr.bf16.mxu1 %v2353_v61  ;;  %v323_v61 = vld [vmem:[#allocation2 + $0x750] sm:$0xff] }
  0x9d   :  { %v2395_v0 = vpack.c.bf16 %v323_v61, %v315_v60  ;;  %v149_v60 = vld [vmem:[#allocation2 + $0x1e0] sm:$0xff]  ;;  %v158_v61 = vld [vmem:[#allocation2 + $0x228] sm:$0xff] }
  0x9f   :  { %2356 = vmatpush1.bf16.msra.mxu1 %v2355_v2  ;;  %v331_v2 = vld [vmem:[#allocation2 + $0x790] sm:$0xff] }
  0xa0   :  { %2358 = vmatprep.subr.bf16.mxu1 %v2357_v3  ;;  %v339_v3 = vld [vmem:[#allocation2 + $0x7d0] sm:$0xff] }
  0xa1   :  { %v2399_v11 = vpack.c.bf16 %v339_v3, %v331_v2  ;;  %v690_v2 = vld [vmem:[#allocation4 + $0x58] sm:$0xff] }
  0xa3   :  { %2360 = vmatpush1.bf16.msra.mxu1 %v2359_v8  ;;  %v2529_v8 = vpack.c.bf16 %v696_v7, %v695_v6  ;;  %v2417_v6 = vpack.c.bf16 %v166_v62, %v158_v61  ;;  %v157_v7 = vld [vmem:[#allocation2 + $0x220] sm:$0xff] }
  0xa4   :  { %2362 = vmatprep.subr.bf16.mxu1 %v2361_v9  ;;  %v679_v9 = vld [vmem:[#allocation4] sm:$0xff] }
  0xa5   :  { %v2531_v12 = vpack.c.bf16 %v680_v10, %v679_v9  ;;  %2530 = vmatprep.subr.bf16.mxu0 %v2529_v8  ;;  %v165_v8 = vld [vmem:[#allocation2 + $0x260] sm:$0xff]  ;;  %v174_v9 = vld [vmem:[#allocation2 + $0x2a8] sm:$0xff] }
  0xa6   :  { %v182_v10 = vld [vmem:[#allocation2 + $0x2e8] sm:$0xff]  ;;  %v269_v62 = vld [vmem:[#allocation2 + $0x5a0] sm:$0xff] }
  0xa7   :  { %2364 = vmatpush1.bf16.msra.mxu1 %v2363_v14  ;;  %v93_v14 = vld [vmem:[#allocation2 + $0x20] sm:$0xff]  ;;  %2532 = vmatpush3.bf16.msra.mxu0 %v2531_v12  ;;  %v2553_v12 = vpack.c.bf16 %v708_v5, %v707_v4 }
  0xa8   :  { %2366 = vmatprep.subr.bf16.mxu1 %v2365_v15  ;;  %v101_v15 = vld [vmem:[#allocation2 + $0x60] sm:$0xff] }
  0xa9   :  { %v2403_v23 = vpack.c.bf16 %v101_v15, %v93_v14  ;;  %v2421_v14 = vpack.c.bf16 %v182_v10, %v174_v9  ;;  %v173_v15 = vld [vmem:[#allocation2 + $0x2a0] sm:$0xff] }
  0xaa   :  { %v285_v4 = vld [vmem:[#allocation2 + $0x620] sm:$0xff] }
  0xab   :  { %2368 = vmatpush1.bf16.msra.mxu1 %v2367_v20  ;;  %v2533_v20 = vpack.c.bf16 %v698_v19, %v697_v18  ;;  %v198_v18 = vld [vmem:[#allocation2 + $0x368] sm:$0xff]  ;;  %v691_v19 = vld [vmem:[#allocation4 + $0x60] sm:$0xff] }
  0xac   :  { %2370 = vmatprep.subr.bf16.mxu1 %v2369_v21  ;;  %v681_v21 = vld [vmem:[#allocation4 + $0x10] sm:$0xff]  ;;  %v293_v5 = vld [vmem:[#allocation2 + $0x660] sm:$0xff] }
  0xad   :  { %v2535_v24 = vpack.c.bf16 %v682_v22, %v681_v21  ;;  %2534 = vmatprep.subr.bf16.mxu0 %v2533_v20  ;;  %v692_v20 = vld [vmem:[#allocation4 + $0x68] sm:$0xff]  ;;  %v2423_v21 = vpack.c.bf16 %v181_v16, %v173_v15  ;;  %v301_v10 = vld [vmem:[#allocation2 + $0x6a0] sm:$0xff] }
  0xae   :  { %v2555_v22 = vpack.c.bf16 %v692_v20, %v691_v19  ;;  %v317_v16 = vld [vmem:[#allocation2 + $0x720] sm:$0xff]  ;;  %v342_v19 = vld [vmem:[#allocation2 + $0x7e8] sm:$0xff] }
  0xaf   :  { %2372 = vmatpush1.bf16.msra.mxu1 %v2371_v26  ;;  %v109_v26 = vld [vmem:[#allocation2 + $0xa0] sm:$0xff]  ;;  %2536 = vmatpush3.bf16.msra.mxu0 %v2535_v24 }
  0xb0   :  { %2374 = vmatprep.subr.bf16.mxu1 %v2373_v27  ;;  %v117_v27 = vld [vmem:[#allocation2 + $0xe0] sm:$0xff] }
  0xb1   :  { %v2407_v37 = vpack.c.bf16 %v117_v27, %v109_v26  ;;  %v189_v24 = vld [vmem:[#allocation2 + $0x320] sm:$0xff]  ;;  %v206_v26 = vld [vmem:[#allocation2 + $0x3a8] sm:$0xff] }
  0xb2   :  { %v214_v27 = vld [vmem:[#allocation2 + $0x3e8] sm:$0xff] }
  0xb3   :  { %2376 = vmatpush1.bf16.msra.mxu1 %v2375_v32  ;;  %v125_v32 = vld [vmem:[#allocation2 + $0x120] sm:$0xff] }
  0xb4   :  { %2378 = vmatprep.subr.bf16.mxu1 %v2377_v33  ;;  %v2537_v33 = vpack.c.bf16 %v700_v31, %v699_v30  ;;  %v2411_v55 = vpack.c.bf16 %v133_v45, %v125_v32  ;;  %v2557_v30 = vpack.c.bf16 %v710_v29, %v709_v28  ;;  %v693_v31 = vld [vmem:[#allocation4 + $0x70] sm:$0xff]  ;;  %v694_v32 = vld [vmem:[#allocation4 + $0x78] sm:$0xff]  ;;  %v229_v45 = vld [vmem:[#allocation2 + $0x460] sm:$0xff] }
  0xb5   :  { %v95_v28 = vld [vmem:[#allocation2 + $0x30] sm:$0xff] }
  0xb6   :  { %2538 = vmatprep.subr.bf16.mxu0 %v2537_v33  ;;  %v103_v29 = vld [vmem:[#allocation2 + $0x70] sm:$0xff] }
  0xb7   :  { %2380 = vmatpush1.bf16.msra.mxu1 %v2379_v38  ;;  %v2539_v38 = vpack.c.bf16 %v684_v35, %v683_v34  ;;  %v2559_v34 = vpack.c.bf16 %v694_v32, %v693_v31  ;;  %v2429_v35 = vpack.c.bf16 %v214_v27, %v206_v26  ;;  %v120_v31 = vld [vmem:[#allocation2 + $0xf8] sm:$0xff]  ;;  %v2467_v32 = vpack.c.bf16 %v103_v29, %v95_v28  ;;  %v255_v28 = vld [vmem:[#allocation2 + $0x530] sm:$0xff] }
  0xb8   :  { %2382 = vmatprep.subr.bf16.mxu1 %v2381_v39  ;;  %v702_v39 = vld [vmem:[#allocation4 + $0xb8] sm:$0xff]  ;;  %v263_v29 = vld [vmem:[#allocation2 + $0x570] sm:$0xff] }
  0xb9   :  { %2540 = vmatpush3.bf16.msra.mxu0 %v2539_v38  ;;  %v222_v38 = vld [vmem:[#allocation2 + $0x428] sm:$0xff] }
  0xbb   :  { %2384 = vmatpush1.bf16.msra.mxu1 %v2383_v46  ;;  %v2541_v46 = vpack.c.bf16 %v702_v39, %v701_v36  ;;  %v205_v36 = vld [vmem:[#allocation2 + $0x3a0] sm:$0xff]  ;;  %v230_v39 = vld [vmem:[#allocation2 + $0x468] sm:$0xff] }
  0xbc   :  { %2386 = vmatprep.subr.bf16.mxu1 %v2385_v47  ;;  %v703_v47 = vld [vmem:[#allocation4 + $0xc0] sm:$0xff]  ;;  %v2433_v43 = vpack.c.bf16 %v230_v39, %v222_v38 }
  0xbd   :  { %2542 = vmatprep.subr.bf16.mxu0 %v2541_v46  ;;  %v238_v46 = vld [vmem:[#allocation2 + $0x4a8] sm:$0xff] }
  0xbe   :  { %2544 = vmatpush3.bf16.msra.mxu0 %v2543_v51  ;;  %v245_v51 = vld [vmem:[#allocation2 + $0x4e0] sm:$0xff] }
  0xbf   :  { %2388 = vmatpush1.bf16.msra.mxu1 %v2387_v52  ;;  %v2545_v52 = vpack.c.bf16 %v704_v48, %v703_v47  ;;  %v246_v47 = vld [vmem:[#allocation2 + $0x4e8] sm:$0xff] }
  0xc0   :  { %2390 = vmatprep.subr.bf16.mxu1 %v2389_v53  ;;  %v687_v53 = vld [vmem:[#allocation4 + $0x40] sm:$0xff] }
  0xc1   :  { %v2547_v63 = vpack.c.bf16 %v688_v54, %v687_v53  ;;  %2546 = vmatprep.subr.bf16.mxu0 %v2545_v52  ;;  %v254_v52 = vld [vmem:[#allocation2 + $0x528] sm:$0xff] }
  0xc2   :  { %v262_v53 = vld [vmem:[#allocation2 + $0x568] sm:$0xff] }
  0xc3   :  { %2392 = vmatpush1.bf16.msra.mxu1 %v2391_v58  ;;  %v2413_v58 = vpack.c.bf16 %v150_v50, %v142_v49  ;;  %2548 = vmatpush3.bf16.msra.mxu0 %v2547_v63  ;;  %v2437_v49 = vpack.c.bf16 %v246_v47, %v238_v46  ;;  %v237_v50 = vld [vmem:[#allocation2 + $0x4a0] sm:$0xff] }
  0xc4   :  { %2394 = vmatprep.subr.bf16.mxu1 %v2393_v59  ;;  %v141_v59 = vld [vmem:[#allocation2 + $0x1a0] sm:$0xff]  ;;  %v2439_v54 = vpack.c.bf16 %v245_v51, %v237_v50  ;;  %v160_v50 = vld [vmem:[#allocation2 + $0x238] sm:$0xff] }
  0xc5   :  { %v2415_v3 = vpack.c.bf16 %v149_v60, %v141_v59  ;;  %v278_v59 = vld [vmem:[#allocation2 + $0x5e8] sm:$0xff]  ;;  %v277_v63 = vld [vmem:[#allocation2 + $0x5e0] sm:$0xff]  ;;  %v168_v51 = vld [vmem:[#allocation2 + $0x278] sm:$0xff] }
  0xc7   :  { %2396 = vmatpush1.bf16.msra.mxu1 %v2395_v0  ;;  %v2549_v0 = vpack.c.bf16 %v706_v57, %v705_v56  ;;  %v253_v56 = vld [vmem:[#allocation2 + $0x520] sm:$0xff] }
  0xc8   :  { %2398 = vmatprep.subr.bf16.mxu1 %v2397_v1  ;;  %v689_v1 = vld [vmem:[#allocation4 + $0x50] sm:$0xff]  ;;  %v261_v57 = vld [vmem:[#allocation2 + $0x560] sm:$0xff] }
  0xc9   :  { %2550 = vmatprep.subr.bf16.mxu0 %v2549_v0  ;;  %v2443_v60 = vpack.c.bf16 %v261_v57, %v253_v56  ;;  %v286_v0 = vld [vmem:[#allocation2 + $0x628] sm:$0xff]  ;;  %v184_v56 = vld [vmem:[#allocation2 + $0x2f8] sm:$0xff] }
  0xcb   :  { %2400 = vmatpush1.bf16.msra.mxu1 %v2399_v11  ;;  %v2551_v11 = vpack.c.bf16 %v690_v2, %v689_v1  ;;  %v294_v1 = vld [vmem:[#allocation2 + $0x668] sm:$0xff]  ;;  %v2447_v2 = vpack.c.bf16 %v277_v63, %v269_v62  ;;  %v200_v62 = vld [vmem:[#allocation2 + $0x378] sm:$0xff] }
  0xcc   :  { %2402 = vmatprep.subr.bf16.mxu1 %v2401_v13  ;;  %v2419_v13 = vpack.c.bf16 %v165_v8, %v157_v7  ;;  %v310_v7 = vld [vmem:[#allocation2 + $0x6e8] sm:$0xff]  ;;  %v2451_v8 = vpack.c.bf16 %v293_v5, %v285_v4  ;;  %v216_v4 = vld [vmem:[#allocation2 + $0x3f8] sm:$0xff] }
  0xcd   :  { %2552 = vmatpush3.bf16.msra.mxu0 %v2551_v11  ;;  %v309_v11 = vld [vmem:[#allocation2 + $0x6e0] sm:$0xff] }
  0xce   :  { %523 = vmatmul.mubr.f32.vlgmr.msra.gmra.mrb[2].mxu1 %v3287_v40  ;;  %2554 = vmatprep.subr.bf16.mxu0 %v2553_v12  ;;  %v318_v12 = vld [vmem:[#allocation2 + $0x728] sm:$0xff] }
  0xcf   :  { %2404 = vmatpush1.bf16.msra.mxu1 %v2403_v23  ;;  %593 = vmatprep.mubr.f32.mxu1 %v3281_v41  ;;  %v2425_v23 = vpack.c.bf16 %v198_v18, %v190_v17  ;;  %v325_v17 = vld [vmem:[#allocation2 + $0x760] sm:$0xff]  ;;  %v334_v18 = vld [vmem:[#allocation2 + $0x7a8] sm:$0xff] }
  0xd0   :  { %2406 = vmatprep.subr.bf16.mxu1 %v2405_v25  ;;  %v197_v25 = vld [vmem:[#allocation2 + $0x360] sm:$0xff]  ;;  %v2459_v20 = vpack.c.bf16 %v325_v17, %v317_v16  ;;  %v760_v16 = vld [vmem:[#allocation4 + $0x288] sm:$0xff]  ;;  %v240_v17 = vld [vmem:[#allocation2 + $0x4b8] sm:$0xff] }
  0xd1   :  { %2556 = vmatpush3.bf16.msra.mxu0 %v2555_v22  ;;  %v2427_v33 = vpack.c.bf16 %v197_v25, %v189_v24  ;;  %v333_v22 = vld [vmem:[#allocation2 + $0x7a0] sm:$0xff]  ;;  %v96_v24 = vld [vmem:[#allocation2 + $0x38] sm:$0xff] }
  0xd2   :  { %2558 = vmatprep.subr.bf16.mxu0 %v2557_v30  ;;  %v104_v25 = vld [vmem:[#allocation2 + $0x78] sm:$0xff] }
  0xd3   :  { %2408 = vmatpush1.bf16.msra.mxu1 %v2407_v37  ;;  %v213_v37 = vld [vmem:[#allocation2 + $0x3e0] sm:$0xff]  ;;  %v2465_v27 = vpack.c.bf16 %v104_v25, %v96_v24  ;;  %v112_v30 = vld [vmem:[#allocation2 + $0xb8] sm:$0xff] }
  0xd4   :  { %2410 = vmatprep.subr.bf16.mxu1 %v2409_v44  ;;  %v2431_v42 = vpack.c.bf16 %v213_v37, %v205_v36  ;;  %v221_v44 = vld [vmem:[#allocation2 + $0x420] sm:$0xff]  ;;  %v128_v36 = vld [vmem:[#allocation2 + $0x138] sm:$0xff] }
  0xd5   :  { %2560 = vmatpush3.bf16.msra.mxu0 %v2559_v34  ;;  %v2435_v48 = vpack.c.bf16 %v229_v45, %v221_v44  ;;  %v111_v34 = vld [vmem:[#allocation2 + $0xb0] sm:$0xff]  ;;  %v136_v37 = vld [vmem:[#allocation2 + $0x178] sm:$0xff] }
  0xd6   :  { %v2473_v39 = vpack.c.bf16 %v136_v37, %v128_v36  ;;  %v144_v44 = vld [vmem:[#allocation2 + $0x1b8] sm:$0xff] }
  0xd7   :  { %2412 = vmatpush1.bf16.msra.mxu1 %v2411_v55  ;;  %v2441_v55 = vpack.c.bf16 %v262_v53, %v254_v52  ;;  %v152_v45 = vld [vmem:[#allocation2 + $0x1f8] sm:$0xff]  ;;  %v2481_v53 = vpack.c.bf16 %v168_v51, %v160_v50 }
  0xd8   :  { %2414 = vmatprep.subr.bf16.mxu1 %v2413_v58  ;;  %v270_v58 = vld [vmem:[#allocation2 + $0x5a8] sm:$0xff]  ;;  %v2477_v47 = vpack.c.bf16 %v152_v45, %v144_v44  ;;  %v256_v24 = vld [vmem:[#allocation2 + $0x538] sm:$0xff] }
  0xd9   :  { %v2445_v61 = vpack.c.bf16 %v278_v59, %v270_v58  ;;  %v175_v59 = vld [vmem:[#allocation2 + $0x2b0] sm:$0xff]  ;;  %v264_v25 = vld [vmem:[#allocation2 + $0x578] sm:$0xff] }
  0xda   :  { %v288_v36 = vld [vmem:[#allocation2 + $0x638] sm:$0xff] }
  0xdb   :  { %2416 = vmatpush1.bf16.msra.mxu1 %v2415_v3  ;;  %v2449_v3 = vpack.c.bf16 %v294_v1, %v286_v0  ;;  %v191_v1 = vld [vmem:[#allocation2 + $0x330] sm:$0xff]  ;;  %v296_v37 = vld [vmem:[#allocation2 + $0x678] sm:$0xff] }
  0xdc   :  { %2418 = vmatprep.subr.bf16.mxu1 %v2417_v6  ;;  %v302_v6 = vld [vmem:[#allocation2 + $0x6a8] sm:$0xff]  ;;  %v304_v44 = vld [vmem:[#allocation2 + $0x6b8] sm:$0xff] }
  0xdd   :  { %v2453_v9 = vpack.c.bf16 %v310_v7, %v302_v6  ;;  %v207_v7 = vld [vmem:[#allocation2 + $0x3b0] sm:$0xff]  ;;  %v312_v45 = vld [vmem:[#allocation2 + $0x6f8] sm:$0xff] }
  0xde   :  { %v320_v50 = vld [vmem:[#allocation2 + $0x738] sm:$0xff] }
  0xdf   :  { %2420 = vmatpush1.bf16.msra.mxu1 %v2419_v13  ;;  %v326_v13 = vld [vmem:[#allocation2 + $0x768] sm:$0xff]  ;;  %v328_v51 = vld [vmem:[#allocation2 + $0x778] sm:$0xff] }
  0xe0   :  { %2422 = vmatprep.subr.bf16.mxu1 %v2421_v14  ;;  %v2455_v14 = vpack.c.bf16 %v309_v11, %v301_v10  ;;  %v2457_v15 = vpack.c.bf16 %v326_v13, %v318_v12  ;;  %v232_v10 = vld [vmem:[#allocation2 + $0x478] sm:$0xff]  ;;  %v223_v12 = vld [vmem:[#allocation2 + $0x430] sm:$0xff] }
  0xe3   :  { %2424 = vmatpush1.bf16.msra.mxu1 %v2423_v21  ;;  %v2461_v21 = vpack.c.bf16 %v342_v19, %v334_v18  ;;  %v248_v18 = vld [vmem:[#allocation2 + $0x4f8] sm:$0xff] }
  0xe4   :  { %2426 = vmatprep.subr.bf16.mxu1 %v2425_v23  ;;  %v341_v23 = vld [vmem:[#allocation2 + $0x7e0] sm:$0xff] }
  0xe5   :  { %v2463_v26 = vpack.c.bf16 %v341_v23, %v333_v22  ;;  %v239_v22 = vld [vmem:[#allocation2 + $0x4b0] sm:$0xff] }
  0xe6   :  { %v247_v23 = vld [vmem:[#allocation2 + $0x4f0] sm:$0xff] }
  0xe7   :  { %2428 = vmatpush1.bf16.msra.mxu1 %v2427_v33  ;;  %v2469_v33 = vpack.c.bf16 %v120_v31, %v112_v30  ;;  %v272_v30 = vld [vmem:[#allocation2 + $0x5b8] sm:$0xff] }
  0xe8   :  { %2430 = vmatprep.subr.bf16.mxu1 %v2429_v35  ;;  %v119_v35 = vld [vmem:[#allocation2 + $0xf0] sm:$0xff]  ;;  %v280_v31 = vld [vmem:[#allocation2 + $0x5f8] sm:$0xff] }
  0xe9   :  { %v2471_v38 = vpack.c.bf16 %v119_v35, %v111_v34  ;;  %v271_v34 = vld [vmem:[#allocation2 + $0x5b0] sm:$0xff] }
  0xea   :  { %v279_v35 = vld [vmem:[#allocation2 + $0x5f0] sm:$0xff] }
  0xeb   :  { %2432 = vmatpush1.bf16.msra.mxu1 %v2431_v42  ;;  %v127_v42 = vld [vmem:[#allocation2 + $0x130] sm:$0xff] }
  0xec   :  { %2434 = vmatprep.subr.bf16.mxu1 %v2433_v43  ;;  %v135_v43 = vld [vmem:[#allocation2 + $0x170] sm:$0xff] }
  0xed   :  { %v2475_v46 = vpack.c.bf16 %v135_v43, %v127_v42  ;;  %v287_v42 = vld [vmem:[#allocation2 + $0x630] sm:$0xff] }
  0xee   :  { %v295_v43 = vld [vmem:[#allocation2 + $0x670] sm:$0xff] }
  0xef   :  { %2436 = vmatpush1.bf16.msra.mxu1 %v2435_v48  ;;  %v143_v48 = vld [vmem:[#allocation2 + $0x1b0] sm:$0xff] }
  0xf0   :  { %2438 = vmatprep.subr.bf16.mxu1 %v2437_v49  ;;  %v151_v49 = vld [vmem:[#allocation2 + $0x1f0] sm:$0xff] }
  0xf1   :  { %v2479_v52 = vpack.c.bf16 %v151_v49, %v143_v48  ;;  %v303_v48 = vld [vmem:[#allocation2 + $0x6b0] sm:$0xff] }
  0xf2   :  { %v311_v49 = vld [vmem:[#allocation2 + $0x6f0] sm:$0xff] }
  0xf3   :  { %2440 = vmatpush1.bf16.msra.mxu1 %v2439_v54  ;;  %v159_v54 = vld [vmem:[#allocation2 + $0x230] sm:$0xff] }
  0xf4   :  { %2442 = vmatprep.subr.bf16.mxu1 %v2441_v55  ;;  %v176_v55 = vld [vmem:[#allocation2 + $0x2b8] sm:$0xff] }
  0xf5   :  { %v2485_v58 = vpack.c.bf16 %v184_v56, %v176_v55  ;;  %v336_v55 = vld [vmem:[#allocation2 + $0x7b8] sm:$0xff] }
  0xf6   :  { %v344_v56 = vld [vmem:[#allocation2 + $0x7f8] sm:$0xff] }
  0xf7   :  { %2444 = vmatpush1.bf16.msra.mxu1 %v2443_v60  ;;  %v183_v60 = vld [vmem:[#allocation2 + $0x2f0] sm:$0xff] }
  0xf8   :  { %2446 = vmatprep.subr.bf16.mxu1 %v2445_v61  ;;  %v192_v61 = vld [vmem:[#allocation2 + $0x338] sm:$0xff]  ;;  %v2487_v63 = vpack.c.bf16 %v183_v60, %v175_v59  ;;  %v335_v59 = vld [vmem:[#allocation2 + $0x7b0] sm:$0xff] }
  0xf9   :  { %v2489_v0 = vpack.c.bf16 %v200_v62, %v192_v61  ;;  %v343_v60 = vld [vmem:[#allocation2 + $0x7f0] sm:$0xff]  ;;  %v727_v61 = vld [vmem:[#allocation4 + $0x180] sm:$0xff]  ;;  %v728_v62 = vld [vmem:[#allocation4 + $0x188] sm:$0xff] }
  0xfb   :  { %2448 = vmatpush1.bf16.msra.mxu1 %v2447_v2  ;;  %v199_v2 = vld [vmem:[#allocation2 + $0x370] sm:$0xff] }
  0xfc   :  { %2450 = vmatprep.subr.bf16.mxu1 %v2449_v3  ;;  %v208_v3 = vld [vmem:[#allocation2 + $0x3b8] sm:$0xff]  ;;  %v2491_v5 = vpack.c.bf16 %v199_v2, %v191_v1  ;;  %v711_v1 = vld [vmem:[#allocation4 + $0x100] sm:$0xff]  ;;  %v712_v2 = vld [vmem:[#allocation4 + $0x108] sm:$0xff] }
  0xfd   :  { %v2493_v6 = vpack.c.bf16 %v216_v4, %v208_v3  ;;  %v729_v3 = vld [vmem:[#allocation4 + $0x190] sm:$0xff]  ;;  %v730_v4 = vld [vmem:[#allocation4 + $0x198] sm:$0xff] }
  0xff   :  { %2452 = vmatpush1.bf16.msra.mxu1 %v2451_v8  ;;  %v215_v8 = vld [vmem:[#allocation2 + $0x3f0] sm:$0xff] }
 0x100   :  { %2454 = vmatprep.subr.bf16.mxu1 %v2453_v9  ;;  %v224_v9 = vld [vmem:[#allocation2 + $0x438] sm:$0xff]  ;;  %v2495_v11 = vpack.c.bf16 %v215_v8, %v207_v7  ;;  %v713_v7 = vld [vmem:[#allocation4 + $0x110] sm:$0xff] }
 0x101   :  { %v2497_v13 = vpack.c.bf16 %v232_v10, %v224_v9  ;;  %v714_v8 = vld [vmem:[#allocation4 + $0x118] sm:$0xff]  ;;  %v731_v9 = vld [vmem:[#allocation4 + $0x1a0] sm:$0xff]  ;;  %v732_v10 = vld [vmem:[#allocation4 + $0x1a8] sm:$0xff] }
 0x103   :  { %2456 = vmatpush1.bf16.msra.mxu1 %v2455_v14  ;;  %v231_v14 = vld [vmem:[#allocation2 + $0x470] sm:$0xff] }
 0x104   :  { %2458 = vmatprep.subr.bf16.mxu1 %v2457_v15  ;;  %v759_v15 = vld [vmem:[#allocation4 + $0x280] sm:$0xff] }
 0x105   :  { %v2593_v19 = vpack.c.bf16 %v760_v16, %v759_v15  ;;  %v733_v15 = vld [vmem:[#allocation4 + $0x1b0] sm:$0xff]  ;;  %v734_v16 = vld [vmem:[#allocation4 + $0x1b8] sm:$0xff] }
 0x107   :  { %2460 = vmatpush1.bf16.msra.mxu1 %v2459_v20  ;;  %v2499_v20 = vpack.c.bf16 %v231_v14, %v223_v12  ;;  %2594 = vmatprep.subr.bf16.mxu0 %v2593_v19  ;;  %v2569_v12 = vpack.c.bf16 %v732_v10, %v731_v9  ;;  %v716_v14 = vld [vmem:[#allocation4 + $0x128] sm:$0xff]  ;;  %v2573_v19 = vpack.c.bf16 %v734_v16, %v733_v15  ;;  %v747_v10 = vld [vmem:[#allocation4 + $0x220] sm:$0xff]  ;;  %v749_v16 = vld [vmem:[#allocation4 + $0x230] sm:$0xff] }
 0x108   :  { %2462 = vmatprep.subr.bf16.mxu1 %v2461_v21  ;;  %v2501_v21 = vpack.c.bf16 %v248_v18, %v240_v17  ;;  %v347_v17 = vlaneseq }
 0x10b   :  { %2464 = vmatpush1.bf16.msra.mxu1 %v2463_v26  ;;  %v2503_v26 = vpack.c.bf16 %v247_v23, %v239_v22  ;;  %v735_v22 = vld [vmem:[#allocation4 + $0x1c0] sm:$0xff]  ;;  %v736_v23 = vld [vmem:[#allocation4 + $0x1c8] sm:$0xff] }
 0x10c   :  { %2466 = vmatprep.subr.bf16.mxu1 %v2465_v27  ;;  %v2505_v27 = vpack.c.bf16 %v264_v25, %v256_v24  ;;  %v3296_v24 = vshrl.u32 %v347_v17, 7  ;;  %v2577_v25 = vpack.c.bf16 %v736_v23, %v735_v22  ;;  %v750_v17 = vld [vmem:[#allocation4 + $0x238] sm:$0xff]  ;;  %v751_v22 = vld [vmem:[#allocation4 + $0x240] sm:$0xff]  ;;  %v752_v23 = vld [vmem:[#allocation4 + $0x248] sm:$0xff] }
 0x10e   :  { %594 = vmatmul.mubr.f32.vlgmr.msra.gmra.mrb[4].mxu1 %v3287_v40 }
 0x10f   :  { %2468 = vmatpush1.bf16.msra.mxu1 %v2467_v32  ;;  %664 = vmatprep.mubr.f32.mxu1 %v3281_v41  ;;  %v167_v41 = vld [vmem:[#allocation2 + $0x270] sm:$0xff]  ;;  %v2507_v32 = vpack.c.bf16 %v263_v29, %v255_v28  ;;  %v738_v29 = vld [vmem:[#allocation4 + $0x1d8] sm:$0xff] }
 0x110   :  { %2470 = vmatprep.subr.bf16.mxu1 %v2469_v33  ;;  %v2483_v57 = vpack.c.bf16 %v167_v41, %v159_v54  ;;  %v2509_v33 = vpack.c.bf16 %v280_v31, %v272_v30  ;;  %v319_v54 = vld [vmem:[#allocation2 + $0x730] sm:$0xff]  ;;  %v3299_v30 = vsub.s32 0, %v3296_v24  ;;  %v3304_v31 = vld [vmem:[%s3404_s2] sm:$0xff] }
 0x111   :  { %v327_v41 = vld [vmem:[#allocation2 + $0x770] sm:$0xff] }
 0x112   :  { %v737_v28 = vld [vmem:[#allocation4 + $0x1d0] sm:$0xff] }
 0x113   :  { %2472 = vmatpush1.bf16.msra.mxu1 %v2471_v38  ;;  %v2511_v38 = vpack.c.bf16 %v279_v35, %v271_v34  ;;  %v2581_v34 = vpack.c.bf16 %v738_v29, %v737_v28  ;;  %v721_v35 = vld [vmem:[#allocation4 + $0x150] sm:$0xff]  ;;  %v754_v29 = vld [vmem:[#allocation4 + $0x258] sm:$0xff] }
 0x114   :  { %2474 = vmatprep.subr.bf16.mxu1 %v2473_v39  ;;  %v2513_v39 = vpack.c.bf16 %v296_v37, %v288_v36  ;;  %v722_v36 = vld [vmem:[#allocation4 + $0x158] sm:$0xff]  ;;  %v739_v37 = vld [vmem:[#allocation4 + $0x1e0] sm:$0xff]  ;;  %v753_v28 = vld [vmem:[#allocation4 + $0x250] sm:$0xff] }
 0x117   :  { %2476 = vmatpush1.bf16.msra.mxu1 %v2475_v46  ;;  %v2515_v46 = vpack.c.bf16 %v295_v43, %v287_v42  ;;  %v2583_v43 = vpack.c.bf16 %v722_v36, %v721_v35  ;;  %v2615_v35 = vpack.c.bf16 %v754_v29, %v753_v28  ;;  %v787_v29 = vld [vmem:[#allocation4 + $0x360] sm:$0xff] }
 0x118   :  { %2478 = vmatprep.subr.bf16.mxu1 %v2477_v47  ;;  %v2517_v47 = vpack.c.bf16 %v312_v45, %v304_v44  ;;  %v723_v45 = vld [vmem:[#allocation4 + $0x160] sm:$0xff] }
 0x11b   :  { %2480 = vmatpush1.bf16.msra.mxu1 %v2479_v52  ;;  %v2519_v52 = vpack.c.bf16 %v311_v49, %v303_v48  ;;  %v741_v48 = vld [vmem:[#allocation4 + $0x1f0] sm:$0xff]  ;;  %v742_v49 = vld [vmem:[#allocation4 + $0x1f8] sm:$0xff] }
 0x11c   :  { %2482 = vmatprep.subr.bf16.mxu1 %v2481_v53  ;;  %v2521_v53 = vpack.c.bf16 %v328_v51, %v320_v50 }
 0x11f   :  { %2484 = vmatpush1.bf16.msra.mxu1 %v2483_v57  ;;  %v2523_v57 = vpack.c.bf16 %v327_v41, %v319_v54 }
 0x120   :  { %2486 = vmatprep.subr.bf16.mxu1 %v2485_v58  ;;  %v2525_v58 = vpack.c.bf16 %v344_v56, %v336_v55  ;;  %v761_v55 = vld [vmem:[#allocation4 + $0x290] sm:$0xff]  ;;  %v762_v56 = vld [vmem:[#allocation4 + $0x298] sm:$0xff] }
 0x123   :  { %2488 = vmatpush1.bf16.msra.mxu1 %v2487_v63  ;;  %v2527_v63 = vpack.c.bf16 %v343_v60, %v335_v59  ;;  %v725_v59 = vld [vmem:[#allocation4 + $0x170] sm:$0xff]  ;;  %v726_v60 = vld [vmem:[#allocation4 + $0x178] sm:$0xff] }
 0x124   :  { %2490 = vmatprep.subr.bf16.mxu1 %v2489_v0  ;;  %v2561_v0 = vpack.c.bf16 %v728_v62, %v727_v61 }
 0x127   :  { %2492 = vmatpush1.bf16.msra.mxu1 %v2491_v5  ;;  %v2563_v5 = vpack.c.bf16 %v712_v2, %v711_v1  ;;  %v746_v1 = vld [vmem:[#allocation4 + $0x218] sm:$0xff]  ;;  %v2591_v2 = vpack.c.bf16 %v726_v60, %v725_v59 }
 0x128   :  { %2494 = vmatprep.subr.bf16.mxu1 %v2493_v6  ;;  %v2565_v6 = vpack.c.bf16 %v730_v4, %v729_v3  ;;  %v763_v3 = vld [vmem:[#allocation4 + $0x2a0] sm:$0xff]  ;;  %v764_v4 = vld [vmem:[#allocation4 + $0x2a8] sm:$0xff] }
 0x129   :  { %v2601_v9 = vpack.c.bf16 %v764_v4, %v763_v3 }
 0x12b   :  { %2496 = vmatpush1.bf16.msra.mxu1 %v2495_v11  ;;  %v2567_v11 = vpack.c.bf16 %v714_v8, %v713_v7 }
 0x12c   :  { %2498 = vmatprep.subr.bf16.mxu1 %v2497_v13  ;;  %v715_v13 = vld [vmem:[#allocation4 + $0x120] sm:$0xff] }
 0x12d   :  { %v2571_v18 = vpack.c.bf16 %v716_v14, %v715_v13  ;;  %v766_v13 = vld [vmem:[#allocation4 + $0x2b8] sm:$0xff] }
 0x12f   :  { %2500 = vmatpush1.bf16.msra.mxu1 %v2499_v20  ;;  %v717_v20 = vld [vmem:[#allocation4 + $0x130] sm:$0xff] }
 0x130   :  { %2502 = vmatprep.subr.bf16.mxu1 %v2501_v21  ;;  %v718_v21 = vld [vmem:[#allocation4 + $0x138] sm:$0xff] }
 0x133   :  { %2504 = vmatpush1.bf16.msra.mxu1 %v2503_v26  ;;  %v719_v26 = vld [vmem:[#allocation4 + $0x140] sm:$0xff] }
 0x134   :  { %2506 = vmatprep.subr.bf16.mxu1 %v2505_v27  ;;  %v720_v27 = vld [vmem:[#allocation4 + $0x148] sm:$0xff] }
 0x137   :  { %2508 = vmatpush1.bf16.msra.mxu1 %v2507_v32  ;;  %v3307_v32 = vsub.s32 1, %v3296_v24 }
 0x138   :  { %2510 = vmatprep.subr.bf16.mxu1 %v2509_v33  ;;  %v2579_v33 = vpack.c.bf16 %v720_v27, %v719_v26  ;;  %v2611_v26 = vpack.c.bf16 %v752_v23, %v751_v22  ;;  %v785_v23 = vld [vmem:[#allocation4 + $0x350] sm:$0xff] }
 0x139   :  { %v354_v42 = vrot.slane %v3304_v31, %v3307_v32 }
 0x13b   :  { %2512 = vmatpush1.bf16.msra.mxu1 %v2511_v38  ;;  %v740_v38 = vld [vmem:[#allocation4 + $0x1e8] sm:$0xff] }
 0x13c   :  { %2514 = vmatprep.subr.bf16.mxu1 %v2513_v39  ;;  %v350_v39 = vrot.slane %v3304_v31, %v3299_v30  ;;  %v2585_v44 = vpack.c.bf16 %v740_v38, %v739_v37  ;;  %v755_v37 = vld [vmem:[#allocation4 + $0x260] sm:$0xff]  ;;  %v756_v38 = vld [vmem:[#allocation4 + $0x268] sm:$0xff] }
 0x13f   :  { %2516 = vmatpush1.bf16.msra.mxu1 %v2515_v46  ;;  %v724_v46 = vld [vmem:[#allocation4 + $0x168] sm:$0xff] }
 0x140   :  { %2518 = vmatprep.subr.bf16.mxu1 %v2517_v47  ;;  %v2587_v41 = vpack.c.bf16 %v724_v46, %v723_v45  ;;  %v757_v45 = vld [vmem:[#allocation4 + $0x270] sm:$0xff]  ;;  %v758_v46 = vld [vmem:[#allocation4 + $0x278] sm:$0xff] }
 0x143   :  { %2520 = vmatpush1.bf16.msra.mxu1 %v2519_v52  ;;  %v743_v52 = vld [vmem:[#allocation4 + $0x200] sm:$0xff] }
 0x144   :  { %2522 = vmatprep.subr.bf16.mxu1 %v2521_v53  ;;  %v744_v53 = vld [vmem:[#allocation4 + $0x208] sm:$0xff] }
 0x145   :  { %v2595_v62 = vpack.c.bf16 %v744_v53, %v743_v52 }
 0x147   :  { %2524 = vmatpush1.bf16.msra.mxu1 %v2523_v57 }
 0x148   :  { %2526 = vmatprep.subr.bf16.mxu1 %v2525_v58  ;;  %v2589_v58 = vpack.c.bf16 %v742_v49, %v741_v48  ;;  %v357_v48 = vsub.s32 2, %v3296_v24  ;;  %v361_v49 = vsub.s32 3, %v3296_v24 }
 0x14b   :  { %2528 = vmatpush1.bf16.msra.mxu1 %v2527_v63  ;;  %v2597_v63 = vpack.c.bf16 %v762_v56, %v761_v55  ;;  %v776_v55 = vld [vmem:[#allocation4 + $0x308] sm:$0xff] }
 0x14c   :  { %2562 = vmatprep.subr.bf16.mxu1 %v2561_v0  ;;  %v745_v0 = vld [vmem:[#allocation4 + $0x210] sm:$0xff] }
 0x14d   :  { %v2599_v7 = vpack.c.bf16 %v746_v1, %v745_v0  ;;  %v778_v0 = vld [vmem:[#allocation4 + $0x318] sm:$0xff]  ;;  %v795_v1 = vld [vmem:[#allocation4 + $0x3a0] sm:$0xff] }
 0x14e   :  { %665 = vmatmul.mubr.f32.vlgmr.msra.gmra.mrb[6].mxu1 %v3287_v40  ;;  %v2575_v40 = vpack.c.bf16 %v718_v21, %v717_v20  ;;  %v2607_v20 = vpack.c.bf16 %v750_v17, %v749_v16  ;;  %v783_v17 = vld [vmem:[#allocation4 + $0x340] sm:$0xff] }
 0x14f   :  { %2564 = vmatpush3.bf16.msra.mxu1 %v2563_v5  ;;  %v791_v5 = vld [vmem:[#allocation4 + $0x380] sm:$0xff] }
 0x150   :  { %2566 = vmatprep.subr.bf16.mxu1 %v2565_v6  ;;  %v792_v6 = vld [vmem:[#allocation4 + $0x388] sm:$0xff] }
 0x151   :  { %v2625_v8 = vpack.c.bf16 %v792_v6, %v791_v5  ;;  %v779_v5 = vld [vmem:[#allocation4 + $0x320] sm:$0xff]  ;;  %v780_v6 = vld [vmem:[#allocation4 + $0x328] sm:$0xff] }
 0x153   :  { %2568 = vmatpush3.bf16.msra.mxu1 %v2567_v11  ;;  %v748_v11 = vld [vmem:[#allocation4 + $0x228] sm:$0xff] }
 0x154   :  { %2570 = vmatprep.subr.bf16.mxu1 %v2569_v12  ;;  %v765_v12 = vld [vmem:[#allocation4 + $0x2b0] sm:$0xff]  ;;  %v2603_v14 = vpack.c.bf16 %v748_v11, %v747_v10 }
 0x155   :  { %v2605_v15 = vpack.c.bf16 %v766_v13, %v765_v12  ;;  %v781_v11 = vld [vmem:[#allocation4 + $0x330] sm:$0xff]  ;;  %v782_v12 = vld [vmem:[#allocation4 + $0x338] sm:$0xff]  ;;  %v799_v13 = vld [vmem:[#allocation4 + $0x3c0] sm:$0xff] }
 0x157   :  { %2572 = vmatpush3.bf16.msra.mxu1 %v2571_v18  ;;  %v767_v18 = vld [vmem:[#allocation4 + $0x2c0] sm:$0xff] }
 0x158   :  { %2574 = vmatprep.subr.bf16.mxu1 %v2573_v19  ;;  %v768_v19 = vld [vmem:[#allocation4 + $0x2c8] sm:$0xff] }
 0x159   :  { %v2609_v21 = vpack.c.bf16 %v768_v19, %v767_v18  ;;  %v784_v18 = vld [vmem:[#allocation4 + $0x348] sm:$0xff]  ;;  %v801_v19 = vld [vmem:[#allocation4 + $0x3d0] sm:$0xff] }
 0x15b   :  { %2576 = vmatpush3.bf16.msra.mxu1 %v2575_v40  ;;  %v769_v40 = vld [vmem:[#allocation4 + $0x2d0] sm:$0xff] }
 0x15c   :  { %2578 = vmatprep.subr.bf16.mxu1 %v2577_v25  ;;  %v770_v25 = vld [vmem:[#allocation4 + $0x2d8] sm:$0xff] }
 0x15d   :  { %v2613_v27 = vpack.c.bf16 %v770_v25, %v769_v40  ;;  %v786_v40 = vld [vmem:[#allocation4 + $0x358] sm:$0xff]  ;;  %v803_v25 = vld [vmem:[#allocation4 + $0x3e0] sm:$0xff] }
 0x15f   :  { %2580 = vmatpush3.bf16.msra.mxu1 %v2579_v33  ;;  %v771_v33 = vld [vmem:[#allocation4 + $0x2e0] sm:$0xff] }
 0x160   :  { %2582 = vmatprep.subr.bf16.mxu1 %v2581_v34  ;;  %v772_v34 = vld [vmem:[#allocation4 + $0x2e8] sm:$0xff] }
 0x161   :  { %v453_v47 = vpop.f32.mrb[0].mxu1  ;;  %v2617_v36 = vpack.c.bf16 %v772_v34, %v771_v33  ;;  %v788_v33 = vld [vmem:[#allocation4 + $0x368] sm:$0xff]  ;;  %v805_v34 = vld [vmem:[#allocation4 + $0x3f0] sm:$0xff] }
 0x162   :  { %v454_v50 = vadd.f32 %v453_v47, %v350_v39  ;;  %v455_v51 = vpop.f32.mrb[1].mxu1  ;;  %v773_v39 = vld [vmem:[#allocation4 + $0x2f0] sm:$0xff]  ;;  %v2623_v47 = vpack.c.bf16 %v758_v46, %v757_v45 }
 0x163   :  { %v456_v54 = vadd.f32 %v455_v51, %v354_v42  ;;  %2584 = vmatpush3.bf16.msra.mxu1 %v2583_v43  ;;  %v774_v42 = vld [vmem:[#allocation4 + $0x2f8] sm:$0xff]  ;;  %v2619_v43 = vpack.c.bf16 %v756_v38, %v755_v37  ;;  %v362_v51 = vrot.slane %v3304_v31, %v361_v49  ;;  %v789_v38 = vld [vmem:[#allocation4 + $0x370] sm:$0xff] }
 0x164   :  { %v671_v57 = vmax.f32 %v454_v50, 0.0  ;;  %2586 = vmatprep.subr.bf16.mxu1 %v2585_v44  ;;  %v2621_v44 = vpack.c.bf16 %v774_v42, %v773_v39  ;;  %v358_v50 = vrot.slane %v3304_v31, %v357_v48  ;;  %v790_v39 = vld [vmem:[#allocation4 + $0x378] sm:$0xff] }
 0x165   :  { %v672_v61 = vmax.f32 %v456_v54, 0.0  ;;  %v2655_v42 = vpack.c.bf16 %v790_v39, %v789_v38  ;;  %v1137_v38 = vld [vmem:[#allocation6 + $0x150] sm:$0xff] }
 0x167   :  { %878 = vmatprep.mubr.f32.mxu0 %v672_v61  ;;  %2588 = vmatpush3.bf16.msra.mxu1 %v2587_v41  ;;  %v775_v41 = vld [vmem:[#allocation4 + $0x300] sm:$0xff] }
 0x168   :  { %879 = vmatmul.mubr.f32.vlgmr.msra.gmra.mrb[0].mxu0 %v671_v57  ;;  %2590 = vmatprep.subr.bf16.mxu1 %v2589_v58  ;;  %v793_v57 = vld [vmem:[#allocation4 + $0x390] sm:$0xff]  ;;  %v794_v58 = vld [vmem:[#allocation4 + $0x398] sm:$0xff]  ;;  %v2627_v61 = vpack.c.bf16 %v776_v55, %v775_v41  ;;  %v373_v41 = vsub.s32 6, %v3296_v24  ;;  %v377_v55 = vsub.s32 7, %v3296_v24 }
 0x169   :  { %2596 = vmatpush3.bf16.msra.mxu0 %v2595_v62  ;;  %v2629_v62 = vpack.c.bf16 %v794_v58, %v793_v57 }
 0x16a   :  { %2598 = vmatprep.subr.bf16.mxu0 %v2597_v63  ;;  %v777_v63 = vld [vmem:[#allocation4 + $0x310] sm:$0xff]  ;;  %v378_v57 = vrot.slane %v3304_v31, %v377_v55 }
 0x16b   :  { %2592 = vmatpush3.bf16.msra.mxu1 %v2591_v2  ;;  %v796_v2 = vld [vmem:[#allocation4 + $0x3a8] sm:$0xff]  ;;  %v2631_v3 = vpack.c.bf16 %v778_v0, %v777_v63 }
 0x16c   :  { %2626 = vmatprep.subr.bf16.mxu1 %v2625_v8  ;;  %v2633_v4 = vpack.c.bf16 %v796_v2, %v795_v1  ;;  %v798_v8 = vld [vmem:[#allocation4 + $0x3b8] sm:$0xff] }
 0x16d   :  { %2600 = vmatpush3.bf16.msra.mxu0 %v2599_v7  ;;  %v797_v7 = vld [vmem:[#allocation4 + $0x3b0] sm:$0xff] }
 0x16e   :  { %2602 = vmatprep.subr.bf16.mxu0 %v2601_v9  ;;  %v2635_v9 = vpack.c.bf16 %v780_v6, %v779_v5  ;;  %v2637_v10 = vpack.c.bf16 %v798_v8, %v797_v7  ;;  %v1098_v5 = vld [vmem:[#allocation6 + $0x18] sm:$0xff]  ;;  %v1095_v8 = vld [vmem:[#allocation6] sm:$0xff] }
 0x16f   :  { %v1106_v7 = vld [vmem:[#allocation6 + $0x58] sm:$0xff] }
 0x171   :  { %2604 = vmatpush3.bf16.msra.mxu0 %v2603_v14  ;;  %v800_v14 = vld [vmem:[#allocation4 + $0x3c8] sm:$0xff] }
 0x172   :  { %2606 = vmatprep.subr.bf16.mxu0 %v2605_v15  ;;  %v2639_v15 = vpack.c.bf16 %v782_v12, %v781_v11  ;;  %v2641_v16 = vpack.c.bf16 %v800_v14, %v799_v13  ;;  %v1097_v11 = vld [vmem:[#allocation6 + $0x10] sm:$0xff]  ;;  %v1112_v13 = vld [vmem:[#allocation6 + $0x88] sm:$0xff] }
 0x173   :  { %v1105_v12 = vld [vmem:[#allocation6 + $0x50] sm:$0xff] }
 0x174   :  { %v2691_v14 = vpack.c.bf16 %v1105_v12, %v1097_v11 }
 0x175   :  { %2608 = vmatpush3.bf16.msra.mxu0 %v2607_v20  ;;  %v802_v20 = vld [vmem:[#allocation4 + $0x3d8] sm:$0xff] }
 0x176   :  { %2610 = vmatprep.subr.bf16.mxu0 %v2609_v21  ;;  %v2643_v21 = vpack.c.bf16 %v784_v18, %v783_v17  ;;  %v2645_v22 = vpack.c.bf16 %v802_v20, %v801_v19  ;;  %v1122_v17 = vld [vmem:[#allocation6 + $0xd8] sm:$0xff]  ;;  %v1111_v20 = vld [vmem:[#allocation6 + $0x80] sm:$0xff] }
 0x179   :  { %2612 = vmatpush3.bf16.msra.mxu0 %v2611_v26  ;;  %v804_v26 = vld [vmem:[#allocation4 + $0x3e8] sm:$0xff] }
 0x17a   :  { %2614 = vmatprep.subr.bf16.mxu0 %v2613_v27  ;;  %v2647_v27 = vpack.c.bf16 %v786_v40, %v785_v23  ;;  %v2649_v28 = vpack.c.bf16 %v804_v26, %v803_v25  ;;  %v1121_v40 = vld [vmem:[#allocation6 + $0xd0] sm:$0xff]  ;;  %v1128_v25 = vld [vmem:[#allocation6 + $0x108] sm:$0xff] }
 0x17b   :  { %v1136_v26 = vld [vmem:[#allocation6 + $0x148] sm:$0xff] }
 0x17d   :  { %2616 = vmatpush3.bf16.msra.mxu0 %v2615_v35  ;;  %v806_v35 = vld [vmem:[#allocation4 + $0x3f8] sm:$0xff] }
 0x17e   :  { %2618 = vmatprep.subr.bf16.mxu0 %v2617_v36  ;;  %v2651_v36 = vpack.c.bf16 %v788_v33, %v787_v29  ;;  %v2653_v37 = vpack.c.bf16 %v806_v35, %v805_v34  ;;  %v1130_v29 = vld [vmem:[#allocation6 + $0x118] sm:$0xff]  ;;  %v1127_v34 = vld [vmem:[#allocation6 + $0x100] sm:$0xff] }
 0x17f   :  { %v1138_v33 = vld [vmem:[#allocation6 + $0x158] sm:$0xff] }
 0x180   :  { %v2697_v35 = vpack.c.bf16 %v1138_v33, %v1130_v29  ;;  %v1201_v33 = vld [vmem:[#allocation6 + $0x350] sm:$0xff] }
 0x181   :  { %2620 = vmatpush3.bf16.msra.mxu0 %v2619_v43  ;;  %v365_v43 = vsub.s32 4, %v3296_v24 }
 0x182   :  { %2622 = vmatprep.subr.bf16.mxu0 %v2621_v44  ;;  %v369_v44 = vsub.s32 5, %v3296_v24 }
 0x183   :  { %v366_v45 = vrot.slane %v3304_v31, %v365_v43 }
 0x184   :  { %v370_v46 = vrot.slane %v3304_v31, %v369_v44 }
 0x185   :  { %2624 = vmatpush3.bf16.msra.mxu0 %v2623_v47 }
 0x1a1   :  { %v524_v52 = vpop.f32.mrb[2].mxu1 }
 0x1a2   :  { %v525_v53 = vadd.f32 %v524_v52, %v358_v50  ;;  %v526_v54 = vpop.f32.mrb[3].mxu1 }
 0x1a3   :  { %v527_v56 = vadd.f32 %v526_v54, %v362_v51 }
 0x1a4   :  { %v673_v59 = vmax.f32 %v525_v53, 0.0 }
 0x1a5   :  { %v674_v60 = vmax.f32 %v527_v56, 0.0  ;;  %v374_v56 = vrot.slane %v3304_v31, %v373_v41  ;;  %v2689_v31 = vpack.c.bf16 %v1106_v7, %v1098_v5  ;;  %v1176_v7 = vld [vmem:[#allocation6 + $0x288] sm:$0xff] }
 0x1a7   :  { %948 = vmatprep.mubr.f32.mxu1 %v674_v60 }
 0x1a8   :  { %949 = vmatmul.mubr.f32.vlgmr.msra.gmra.mrb[8].mxu1 %v673_v59 }
 0x1a9   :  { %2628 = vmatpush3.bf16.msra.mxu1 %v2627_v61 }
 0x1aa   :  { %2630 = vmatprep.subr.bf16.mxu1 %v2629_v62 }
 0x1ad   :  { %2632 = vmatpush3.bf16.msra.mxu1 %v2631_v3  ;;  %v1096_v3 = vld [vmem:[#allocation6 + $0x8] sm:$0xff] }
 0x1ae   :  { %2634 = vmatprep.subr.bf16.mxu1 %v2633_v4  ;;  %v1104_v4 = vld [vmem:[#allocation6 + $0x48] sm:$0xff] }
 0x1af   :  { %v2657_v6 = vpack.c.bf16 %v1104_v4, %v1096_v3  ;;  %v1167_v3 = vld [vmem:[#allocation6 + $0x240] sm:$0xff]  ;;  %v1161_v4 = vld [vmem:[#allocation6 + $0x210] sm:$0xff] }
 0x1b1   :  { %2636 = vmatpush3.bf16.msra.mxu1 %v2635_v9  ;;  %v1103_v9 = vld [vmem:[#allocation6 + $0x40] sm:$0xff]  ;;  %2658 = vmatprep.subr.bf16.mxu0 %v2657_v6  ;;  %v1169_v6 = vld [vmem:[#allocation6 + $0x250] sm:$0xff] }
 0x1b2   :  { %2638 = vmatprep.subr.bf16.mxu1 %v2637_v10  ;;  %v2659_v10 = vpack.c.bf16 %v1103_v9, %v1095_v8  ;;  %v1184_v8 = vld [vmem:[#allocation6 + $0x2c8] sm:$0xff]  ;;  %v1178_v9 = vld [vmem:[#allocation6 + $0x298] sm:$0xff]  ;;  %v2707_v11 = vpack.c.bf16 %v1169_v6, %v1161_v4 }
 0x1b3   :  { %v2677_v12 = vpack.c.bf16 %v1184_v8, %v1176_v7 }
 0x1b5   :  { %2640 = vmatpush3.bf16.msra.mxu1 %v2639_v15  ;;  %v1120_v15 = vld [vmem:[#allocation6 + $0xc8] sm:$0xff] }
 0x1b6   :  { %2642 = vmatprep.subr.bf16.mxu1 %v2641_v16  ;;  %v1114_v16 = vld [vmem:[#allocation6 + $0x98] sm:$0xff]  ;;  %v2661_v18 = vpack.c.bf16 %v1120_v15, %v1112_v13  ;;  %v1175_v13 = vld [vmem:[#allocation6 + $0x280] sm:$0xff]  ;;  %v1177_v15 = vld [vmem:[#allocation6 + $0x290] sm:$0xff] }
 0x1b7   :  { %v2693_v19 = vpack.c.bf16 %v1122_v17, %v1114_v16  ;;  %v1185_v17 = vld [vmem:[#allocation6 + $0x2d0] sm:$0xff] }
 0x1b9   :  { %2644 = vmatpush3.bf16.msra.mxu1 %v2643_v21  ;;  %v1119_v21 = vld [vmem:[#allocation6 + $0xc0] sm:$0xff] }
 0x1ba   :  { %2646 = vmatprep.subr.bf16.mxu1 %v2645_v22  ;;  %v1113_v22 = vld [vmem:[#allocation6 + $0x90] sm:$0xff]  ;;  %v2663_v23 = vpack.c.bf16 %v1119_v21, %v1111_v20  ;;  %v1194_v20 = vld [vmem:[#allocation6 + $0x318] sm:$0xff] }
 0x1bb   :  { %v1202_v21 = vld [vmem:[#allocation6 + $0x358] sm:$0xff] }
 0x1bd   :  { %2648 = vmatpush3.bf16.msra.mxu1 %v2647_v27  ;;  %v2695_v27 = vpack.c.bf16 %v1121_v40, %v1113_v22 }
 0x1be   :  { %2650 = vmatprep.subr.bf16.mxu1 %v2649_v28  ;;  %v2665_v28 = vpack.c.bf16 %v1136_v26, %v1128_v25  ;;  %v2713_v25 = vpack.c.bf16 %v1202_v21, %v1194_v20  ;;  %v1191_v26 = vld [vmem:[#allocation6 + $0x300] sm:$0xff] }
 0x1bf   :  { %v1115_v20 = vld [vmem:[#allocation6 + $0xa0] sm:$0xff] }
 0x1c0   :  { %v1123_v21 = vld [vmem:[#allocation6 + $0xe0] sm:$0xff] }
 0x1c1   :  { %2652 = vmatpush3.bf16.msra.mxu1 %v2651_v36  ;;  %v1135_v36 = vld [vmem:[#allocation6 + $0x140] sm:$0xff] }
 0x1c2   :  { %2654 = vmatprep.subr.bf16.mxu1 %v2653_v37  ;;  %v1129_v37 = vld [vmem:[#allocation6 + $0x110] sm:$0xff]  ;;  %v2667_v39 = vpack.c.bf16 %v1135_v36, %v1127_v34  ;;  %v2130_v34 = vld [vmem:[%s3406_s4] ss:$0 sm:$0xff] }
 0x1c5   :  { %2656 = vmatpush3.bf16.msra.mxu1 %v2655_v42  ;;  %v1144_v42 = vld [vmem:[#allocation6 + $0x188] sm:$0xff] }
 0x1c6   :  { %2690 = vmatprep.subr.bf16.mxu1 %v2689_v31  ;;  %v1186_v31 = vld [vmem:[#allocation6 + $0x2d8] sm:$0xff] }
 0x1c7   :  { %v2709_v16 = vpack.c.bf16 %v1186_v31, %v1178_v9  ;;  %v1099_v9 = vld [vmem:[#allocation6 + $0x20] sm:$0xff] }
 0x1c8   :  { %v1107_v31 = vld [vmem:[#allocation6 + $0x60] sm:$0xff] }
 0x1e1   :  { %v595_v47 = vpop.f32.mrb[4].mxu1 }
 0x1e2   :  { %v596_v50 = vadd.f32 %v595_v47, %v366_v45  ;;  %v597_v51 = vpop.f32.mrb[5].mxu1  ;;  %v1152_v45 = vld [vmem:[#allocation6 + $0x1c8] sm:$0xff]  ;;  %v2699_v47 = vpack.c.bf16 %v1137_v38, %v1129_v37 }
 0x1e3   :  { %v598_v52 = vadd.f32 %v597_v51, %v370_v46  ;;  %v1146_v46 = vld [vmem:[#allocation6 + $0x198] sm:$0xff]  ;;  %v1208_v37 = vld [vmem:[#allocation6 + $0x388] sm:$0xff] }
 0x1e4   :  { %v675_v53 = vmax.f32 %v596_v50, 0.0  ;;  %v2669_v50 = vpack.c.bf16 %v1152_v45, %v1144_v42  ;;  %v1154_v51 = vld [vmem:[#allocation6 + $0x1d8] sm:$0xff]  ;;  %v1216_v38 = vld [vmem:[#allocation6 + $0x3c8] sm:$0xff] }
 0x1e5   :  { %v676_v54 = vmax.f32 %v598_v52, 0.0  ;;  %v1143_v52 = vld [vmem:[#allocation6 + $0x180] sm:$0xff]  ;;  %v2685_v45 = vpack.c.bf16 %v1216_v38, %v1208_v37 }
 0x1e6   :  { %v1139_v37 = vld [vmem:[#allocation6 + $0x160] sm:$0xff] }
 0x1e7   :  { %1018 = vmatprep.mubr.f32.mxu0 %v676_v54  ;;  %v2701_v54 = vpack.c.bf16 %v1154_v51, %v1146_v46  ;;  %v1218_v46 = vld [vmem:[#allocation6 + $0x3d8] sm:$0xff] }
 0x1e8   :  { %1019 = vmatmul.mubr.f32.vlgmr.msra.gmra.mrb[2].mxu0 %v675_v53  ;;  %v1151_v53 = vld [vmem:[#allocation6 + $0x1c0] sm:$0xff] }
 0x1e9   :  { %2660 = vmatpush1.bf16.msra.mxu0 %v2659_v10 }
 0x1ea   :  { %2662 = vmatprep.subr.bf16.mxu0 %v2661_v18  ;;  %v1192_v18 = vld [vmem:[#allocation6 + $0x308] sm:$0xff] }
 0x1ed   :  { %2664 = vmatpush1.bf16.msra.mxu0 %v2663_v23  ;;  %v2711_v23 = vpack.c.bf16 %v1185_v17, %v1177_v15  ;;  %v1118_v15 = vld [vmem:[#allocation6 + $0xb8] sm:$0xff] }
 0x1ee   :  { %2666 = vmatprep.subr.bf16.mxu0 %v2665_v28  ;;  %v1193_v28 = vld [vmem:[#allocation6 + $0x310] sm:$0xff] }
 0x1f1   :  { %2668 = vmatpush1.bf16.msra.mxu0 %v2667_v39  ;;  %v1210_v39 = vld [vmem:[#allocation6 + $0x398] sm:$0xff] }
 0x1f2   :  { %2670 = vmatprep.subr.bf16.mxu0 %v2669_v50  ;;  %v1215_v50 = vld [vmem:[#allocation6 + $0x3c0] sm:$0xff] }
 0x221   :  { %v666_v58 = vpop.f32.mrb[6].mxu1 }
 0x222   :  { %v667_v59 = vadd.f32 %v666_v58, %v374_v56  ;;  %v668_v60 = vpop.f32.mrb[7].mxu1  ;;  %v1145_v56 = vld [vmem:[#allocation6 + $0x190] sm:$0xff]  ;;  %v1160_v58 = vld [vmem:[#allocation6 + $0x208] sm:$0xff] }
 0x223   :  { %v669_v61 = vadd.f32 %v668_v60, %v378_v57  ;;  %v1153_v57 = vld [vmem:[#allocation6 + $0x1d0] sm:$0xff]  ;;  %v1162_v60 = vld [vmem:[#allocation6 + $0x218] sm:$0xff] }
 0x224   :  { %v677_v63 = vmax.f32 %v667_v59, 0.0  ;;  %v1168_v59 = vld [vmem:[#allocation6 + $0x248] sm:$0xff] }
 0x225   :  { %v678_v62 = vmax.f32 %v669_v61, 0.0  ;;  %v1170_v61 = vld [vmem:[#allocation6 + $0x258] sm:$0xff] }
 0x226   :  { %v2705_v5 = vpack.c.bf16 %v1170_v61, %v1162_v60  ;;  %v1100_v60 = vld [vmem:[#allocation6 + $0x28] sm:$0xff] }
 0x227   :  { %1088 = vmatprep.mubr.f32.mxu1 %v678_v62  ;;  %v2671_v62 = vpack.c.bf16 %v1151_v53, %v1143_v52  ;;  %v2717_v53 = vpack.c.bf16 %v1218_v46, %v1210_v39  ;;  %v1108_v61 = vld [vmem:[#allocation6 + $0x68] sm:$0xff] }
 0x228   :  { %1089 = vmatmul.mubr.f32.vlgmr.msra.gmra.mrb[10].mxu1 %v677_v63  ;;  %v2703_v63 = vpack.c.bf16 %v1153_v57, %v1145_v56  ;;  %v1209_v56 = vld [vmem:[#allocation6 + $0x390] sm:$0xff]  ;;  %v1148_v46 = vld [vmem:[#allocation6 + $0x1a8] sm:$0xff] }
 0x229   :  { %2692 = vmatpush1.bf16.msra.mxu1 %v2691_v14  ;;  %2672 = vmatpush1.bf16.msra.mxu0 %v2671_v62  ;;  %v1183_v14 = vld [vmem:[#allocation6 + $0x2c0] sm:$0xff]  ;;  %v1217_v57 = vld [vmem:[#allocation6 + $0x3d0] sm:$0xff]  ;;  %v1102_v62 = vld [vmem:[#allocation6 + $0x38] sm:$0xff] }
 0x22a   :  { %2694 = vmatprep.subr.bf16.mxu1 %v2693_v19  ;;  %v1200_v19 = vld [vmem:[#allocation6 + $0x348] sm:$0xff]  ;;  %v2679_v22 = vpack.c.bf16 %v1183_v14, %v1175_v13 }
 0x22b   :  { %v2681_v40 = vpack.c.bf16 %v1200_v19, %v1192_v18  ;;  %v1116_v13 = vld [vmem:[#allocation6 + $0xa8] sm:$0xff]  ;;  %v2723_v18 = vpack.c.bf16 %v1107_v31, %v1099_v9 }
 0x22c   :  { %v1124_v14 = vld [vmem:[#allocation6 + $0xe8] sm:$0xff] }
 0x22d   :  { %2696 = vmatpush1.bf16.msra.mxu1 %v2695_v27  ;;  %v1199_v27 = vld [vmem:[#allocation6 + $0x340] sm:$0xff]  ;;  %v1180_v9 = vld [vmem:[#allocation6 + $0x2a8] sm:$0xff] }
 0x22e   :  { %2698 = vmatprep.subr.bf16.mxu1 %v2697_v35  ;;  %v2683_v29 = vpack.c.bf16 %v1199_v27, %v1191_v26  ;;  %v2715_v35 = vpack.c.bf16 %v1201_v33, %v1193_v28  ;;  %v1125_v26 = vld [vmem:[#allocation6 + $0xf0] sm:$0xff]  ;;  %v1132_v27 = vld [vmem:[#allocation6 + $0x128] sm:$0xff]  ;;  %v1142_v33 = vld [vmem:[#allocation6 + $0x178] sm:$0xff] }
 0x22f   :  { %v1140_v28 = vld [vmem:[#allocation6 + $0x168] sm:$0xff] }
 0x230   :  { %v2729_v38 = vpack.c.bf16 %v1140_v28, %v1132_v27  ;;  %v1188_v31 = vld [vmem:[#allocation6 + $0x2e8] sm:$0xff]  ;;  %v1195_v27 = vld [vmem:[#allocation6 + $0x320] sm:$0xff] }
 0x231   :  { %2700 = vmatpush1.bf16.msra.mxu1 %v2699_v47  ;;  %v1207_v47 = vld [vmem:[#allocation6 + $0x380] sm:$0xff] }
 0x232   :  { %2702 = vmatprep.subr.bf16.mxu1 %v2701_v54  ;;  %v2687_v54 = vpack.c.bf16 %v1215_v50, %v1207_v47  ;;  %v1156_v47 = vld [vmem:[#allocation6 + $0x1e8] sm:$0xff]  ;;  %v1150_v50 = vld [vmem:[#allocation6 + $0x1b8] sm:$0xff]  ;;  %v1203_v28 = vld [vmem:[#allocation6 + $0x360] sm:$0xff] }
 0x235   :  { %2704 = vmatpush1.bf16.msra.mxu1 %v2703_v63  ;;  %v2721_v63 = vpack.c.bf16 %v1108_v61, %v1100_v60  ;;  %v1157_v60 = vld [vmem:[#allocation6 + $0x1f0] sm:$0xff]  ;;  %v1164_v61 = vld [vmem:[#allocation6 + $0x228] sm:$0xff] }
 0x236   :  { %2706 = vmatprep.subr.bf16.mxu1 %v2705_v5 }
 0x239   :  { %2708 = vmatpush1.bf16.msra.mxu1 %v2707_v11  ;;  %v1101_v11 = vld [vmem:[#allocation6 + $0x30] sm:$0xff] }
 0x23a   :  { %2710 = vmatprep.subr.bf16.mxu1 %v2709_v16  ;;  %v1126_v16 = vld [vmem:[#allocation6 + $0xf8] sm:$0xff] }
 0x23b   :  { %v2165_v0 = vpop.f32.mrb[0].mxu0 }
 0x23c   :  { %v2166_v1 = vpop.f32.mrb[1].mxu0 }
 0x23d   :  { %v3337_v2 = vadd.f32 %v2166_v1, %v2165_v0  ;;  %v2673_v0 = vpack.c.bf16 %v1168_v59, %v1160_v58  ;;  %v1159_v1 = vld [vmem:[#allocation6 + $0x200] sm:$0xff]  ;;  %2712 = vmatpush1.bf16.msra.mxu1 %v2711_v23  ;;  %v2719_v58 = vpack.c.bf16 %v1217_v57, %v1209_v56  ;;  %v2725_v23 = vpack.c.bf16 %v1124_v14, %v1116_v13 }
 0x23e   :  { %v2675_v10 = vpack.c.bf16 %v1167_v3, %v1159_v1  ;;  %2714 = vmatprep.subr.bf16.mxu1 %v2713_v25  ;;  %v3172_v3 = vmov 0.0   ;;  %v1117_v25 = vld [vmem:[#allocation6 + $0xb0] sm:$0xff]  ;;  %v1155_v56 = vld [vmem:[#allocation6 + $0x1e0] sm:$0xff]  ;;  %v2733_v57 = vpack.c.bf16 %v1156_v47, %v1148_v46 }
 0x23f   :  { %2674 = vmatprep.subr.bf16.mxu0 %v2673_v0  ;;  %v881_v51 = vadd.f32 %v3337_v2, %v2130_v34  ;;  %v1110_v0 = vld [vmem:[#allocation6 + $0x78] sm:$0xff]  ;;  %1329 = vmatprep.mubr.f32.mxu0 %v3172_v3  ;;  %v2727_v34 = vpack.c.bf16 %v1123_v21, %v1115_v20  ;;  %v1179_v14 = vld [vmem:[#allocation6 + $0x2a0] sm:$0xff]  ;;  %v1196_v20 = vld [vmem:[#allocation6 + $0x328] sm:$0xff] }
 0x240   :  { %2676 = vmatpush1.bf16.msra.mxu0 %v2675_v10  ;;  %v2753_v1 = vpack.c.bf16 %v1110_v0, %v1102_v62  ;;  %1400 = vmatprep.mubr.f32.mxu1 %v3172_v3  ;;  %v1172_v62 = vld [vmem:[#allocation6 + $0x268] sm:$0xff]  ;;  %v1174_v0 = vld [vmem:[#allocation6 + $0x278] sm:$0xff]  ;;  %v1211_v46 = vld [vmem:[#allocation6 + $0x3a0] sm:$0xff] }
 0x241   :  { %2678 = vmatprep.subr.bf16.mxu0 %v2677_v12  ;;  %2716 = vmatpush1.bf16.msra.mxu1 %v2715_v35  ;;  %v1109_v12 = vld [vmem:[#allocation6 + $0x70] sm:$0xff]  ;;  %v2759_v35 = vpack.c.bf16 %v1125_v26, %v1117_v25  ;;  %v1204_v21 = vld [vmem:[#allocation6 + $0x368] sm:$0xff] }
 0x242   :  { %2718 = vmatprep.subr.bf16.mxu1 %v2717_v53  ;;  %v2755_v19 = vpack.c.bf16 %v1109_v12, %v1101_v11  ;;  %v1190_v11 = vld [vmem:[#allocation6 + $0x2f8] sm:$0xff] }
 0x244   :  { %2680 = vmatpush1.bf16.msra.mxu0 %v2679_v22 }
 0x245   :  { %2682 = vmatprep.subr.bf16.mxu0 %v2681_v40  ;;  %2720 = vmatpush1.bf16.msra.mxu1 %v2719_v58  ;;  %v2757_v40 = vpack.c.bf16 %v1126_v16, %v1118_v15  ;;  %v1187_v15 = vld [vmem:[#allocation6 + $0x2e0] sm:$0xff]  ;;  %v2741_v16 = vpack.c.bf16 %v1188_v31, %v1180_v9  ;;  %v1567_v9 = vld [vmem:[#allocation7 + $0x50] sm:$0xff]  ;;  %v1570_v31 = vld [vmem:[#allocation7 + $0x68] sm:$0xff] }
 0x246   :  { %2754 = vmatprep.subr.bf16.mxu1 %v2753_v1  ;;  %v2743_v25 = vpack.c.bf16 %v1187_v15, %v1179_v14  ;;  %v1571_v14 = vld [vmem:[#allocation7 + $0x70] sm:$0xff]  ;;  %v1574_v15 = vld [vmem:[#allocation7 + $0x88] sm:$0xff] }
 0x248   :  { %2684 = vmatpush1.bf16.msra.mxu0 %v2683_v29  ;;  %v1134_v29 = vld [vmem:[#allocation6 + $0x138] sm:$0xff] }
 0x249   :  { %2686 = vmatprep.subr.bf16.mxu0 %v2685_v45  ;;  %v2761_v39 = vpack.c.bf16 %v1142_v33, %v1134_v29  ;;  %v1141_v45 = vld [vmem:[#allocation6 + $0x170] sm:$0xff]  ;;  %v2745_v29 = vpack.c.bf16 %v1204_v21, %v1196_v20  ;;  %v1578_v20 = vld [vmem:[#allocation7 + $0xa8] sm:$0xff]  ;;  %v1580_v21 = vld [vmem:[#allocation7 + $0xb8] sm:$0xff] }
 0x24c   :  { %2688 = vmatpush1.bf16.msra.mxu0 %v2687_v54  ;;  %v1147_v54 = vld [vmem:[#allocation6 + $0x1a0] sm:$0xff] }
 0x24d   :  { %2722 = vmatprep.subr.bf16.mxu0 %v2721_v63  ;;  %v1166_v63 = vld [vmem:[#allocation6 + $0x238] sm:$0xff]  ;;  %v2735_v1 = vpack.c.bf16 %v1155_v56, %v1147_v54  ;;  %v1558_v54 = vld [vmem:[#allocation7 + $0x8] sm:$0xff] }
 0x24e   :  { %v1560_v56 = vld [vmem:[#allocation7 + $0x18] sm:$0xff] }
 0x27b   :  { %v2200_v36 = vpop.f32.mrb[8].mxu1 }
 0x27c   :  { %v2201_v42 = vpop.f32.mrb[9].mxu1 }
 0x27d   :  { %v2202_v52 = vadd.f32 %v2201_v42, %v2200_v36  ;;  %v1131_v36 = vld [vmem:[#allocation6 + $0x120] sm:$0xff]  ;;  %v1133_v42 = vld [vmem:[#allocation6 + $0x130] sm:$0xff] }
 0x27e   :  { %v2763_v53 = vpack.c.bf16 %v1141_v45, %v1133_v42  ;;  %v2747_v42 = vpack.c.bf16 %v1203_v28, %v1195_v27  ;;  %v1582_v27 = vld [vmem:[#allocation7 + $0xc8] sm:$0xff]  ;;  %v1584_v28 = vld [vmem:[#allocation7 + $0xd8] sm:$0xff] }
 0x27f   :  { %v951_v59 = vadd.f32 %v2202_v52, %v881_v51  ;;  %v1158_v51 = vld [vmem:[#allocation6 + $0x1f8] sm:$0xff]  ;;  %v2731_v52 = vpack.c.bf16 %v1139_v37, %v1131_v36  ;;  %v1212_v36 = vld [vmem:[#allocation6 + $0x3a8] sm:$0xff] }
 0x280   :  { %v2765_v58 = vpack.c.bf16 %v1158_v51, %v1150_v50  ;;  %v1220_v37 = vld [vmem:[#allocation6 + $0x3e8] sm:$0xff]  ;;  %v1219_v51 = vld [vmem:[#allocation6 + $0x3e0] sm:$0xff] }
 0x281   :  { %v2749_v47 = vpack.c.bf16 %v1220_v37, %v1212_v36  ;;  %v1586_v36 = vld [vmem:[#allocation7 + $0xe8] sm:$0xff]  ;;  %v1588_v37 = vld [vmem:[#allocation7 + $0xf8] sm:$0xff] }
 0x2bb   :  { %v2235_v2 = vpop.f32.mrb[2].mxu0 }
 0x2bc   :  { %v2236_v4 = vpop.f32.mrb[3].mxu0 }
 0x2bd   :  { %v2237_v5 = vadd.f32 %v2236_v4, %v2235_v2  ;;  %v1163_v2 = vld [vmem:[#allocation6 + $0x220] sm:$0xff] }
 0x2be   :  { %v1171_v4 = vld [vmem:[#allocation6 + $0x260] sm:$0xff] }
 0x2bf   :  { %v1021_v6 = vadd.f32 %v2237_v5, %v951_v59  ;;  %v1149_v59 = vld [vmem:[#allocation6 + $0x1b0] sm:$0xff]  ;;  %v2737_v5 = vpack.c.bf16 %v1172_v62, %v1164_v61  ;;  %v2739_v12 = vpack.c.bf16 %v1171_v4, %v1163_v2  ;;  %v1562_v62 = vld [vmem:[#allocation7 + $0x28] sm:$0xff] }
 0x2c0   :  { %v1559_v61 = vld [vmem:[#allocation7 + $0x10] sm:$0xff]  ;;  %v1566_v4 = vld [vmem:[#allocation7 + $0x48] sm:$0xff] }
 0x2c1   :  { %v1563_v2 = vld [vmem:[#allocation7 + $0x30] sm:$0xff] }
 0x2fb   :  { %v2270_v7 = vpop.f32.mrb[10].mxu1 }
 0x2fc   :  { %v2271_v8 = vpop.f32.mrb[11].mxu1 }
 0x2fd   :  { %v2272_v10 = vadd.f32 %v2271_v8, %v2270_v7  ;;  %v1165_v7 = vld [vmem:[#allocation6 + $0x230] sm:$0xff] }
 0x2fe   :  { %v1173_v8 = vld [vmem:[#allocation6 + $0x270] sm:$0xff] }
 0x2ff   :  { %v1091_v17 = vadd.f32 %v2272_v10, %v1021_v6  ;;  %v2769_v6 = vpack.c.bf16 %v1174_v0, %v1166_v63  ;;  %v1182_v10 = vld [vmem:[#allocation6 + $0x2b8] sm:$0xff]  ;;  %v2771_v13 = vpack.c.bf16 %v1173_v8, %v1165_v7  ;;  %v1565_v8 = vld [vmem:[#allocation7 + $0x40] sm:$0xff] }
 0x300   :  { %v1564_v63 = vld [vmem:[#allocation7 + $0x38] sm:$0xff] }
 0x301   :  { %v3343_v22 = vmax.f32 %v1091_v17, 0.0  ;;  %v2773_v17 = vpack.c.bf16 %v1190_v11, %v1182_v10  ;;  %v1572_v10 = vld [vmem:[#allocation7 + $0x78] sm:$0xff]  ;;  %v2795_v11 = vpack.c.bf16 %v1567_v9, %v1565_v8  ;;  %v1603_v8 = vld [vmem:[#allocation7 + $0x170] sm:$0xff]  ;;  %v1606_v9 = vld [vmem:[#allocation7 + $0x188] sm:$0xff] }
 0x303   :  { %1330 = vmatmul.mubr.f32.vlgmr.msra.gmra.mrb[4].mxu0 %v3343_v22  ;;  %1401 = vmatmul.mubr.f32.vlgmr.msra.gmra.mrb[12].mxu1 %v3343_v22 }
 0x304   :  { %2724 = vmatpush1.bf16.msra.mxu0 %v2723_v18  ;;  %2756 = vmatpush1.bf16.msra.mxu1 %v2755_v19  ;;  %v1181_v18 = vld [vmem:[#allocation6 + $0x2b0] sm:$0xff] }
 0x305   :  { %2726 = vmatprep.subr.bf16.mxu0 %v2725_v23  ;;  %2758 = vmatprep.subr.bf16.mxu1 %v2757_v40  ;;  %v1189_v19 = vld [vmem:[#allocation6 + $0x2f0] sm:$0xff]  ;;  %v1198_v23 = vld [vmem:[#allocation6 + $0x338] sm:$0xff] }
 0x306   :  { %1471 = vmatprep.mubr.f32.mxu0 %v3172_v3  ;;  %1542 = vmatprep.mubr.f32.mxu1 %v3172_v3  ;;  %v2767_v3 = vpack.c.bf16 %v1157_v60, %v1149_v59  ;;  %v1206_v40 = vld [vmem:[#allocation6 + $0x378] sm:$0xff]  ;;  %v2775_v26 = vpack.c.bf16 %v1189_v19, %v1181_v18  ;;  %v2785_v59 = vpack.c.bf16 %v1560_v56, %v1558_v54  ;;  %v1557_v60 = vld [vmem:[#allocation7] sm:$0xff]  ;;  %v1575_v19 = vld [vmem:[#allocation7 + $0x90] sm:$0xff] }
 0x307   :  { %v2777_v33 = vpack.c.bf16 %v1206_v40, %v1198_v23  ;;  %v2787_v0 = vpack.c.bf16 %v1559_v61, %v1557_v60  ;;  %v1573_v18 = vld [vmem:[#allocation7 + $0x80] sm:$0xff]  ;;  %v2805_v40 = vpack.c.bf16 %v1580_v21, %v1578_v20  ;;  %v1594_v54 = vld [vmem:[#allocation7 + $0x128] sm:$0xff]  ;;  %v1596_v56 = vld [vmem:[#allocation7 + $0x138] sm:$0xff] }
 0x308   :  { %2728 = vmatpush1.bf16.msra.mxu0 %v2727_v34  ;;  %2760 = vmatpush1.bf16.msra.mxu1 %v2759_v35  ;;  %v1197_v34 = vld [vmem:[#allocation6 + $0x330] sm:$0xff]  ;;  %v2803_v23 = vpack.c.bf16 %v1575_v19, %v1573_v18  ;;  %v1598_v61 = vld [vmem:[#allocation7 + $0x148] sm:$0xff]  ;;  %v1616_v20 = vld [vmem:[#allocation7 + $0x1d8] sm:$0xff] }
 0x309   :  { %2730 = vmatprep.subr.bf16.mxu0 %v2729_v38  ;;  %2762 = vmatprep.subr.bf16.mxu1 %v2761_v39  ;;  %v1205_v35 = vld [vmem:[#allocation6 + $0x370] sm:$0xff]  ;;  %v1214_v38 = vld [vmem:[#allocation6 + $0x3b8] sm:$0xff]  ;;  %v1614_v19 = vld [vmem:[#allocation7 + $0x1c8] sm:$0xff] }
 0x30a   :  { %v1222_v39 = vld [vmem:[#allocation6 + $0x3f8] sm:$0xff]  ;;  %v2779_v45 = vpack.c.bf16 %v1205_v35, %v1197_v34  ;;  %v1581_v34 = vld [vmem:[#allocation7 + $0xc0] sm:$0xff]  ;;  %v1583_v35 = vld [vmem:[#allocation7 + $0xd0] sm:$0xff] }
 0x30b   :  { %v2781_v50 = vpack.c.bf16 %v1222_v39, %v1214_v38  ;;  %v2811_v38 = vpack.c.bf16 %v1583_v35, %v1581_v34  ;;  %v2813_v39 = vpack.c.bf16 %v1588_v37, %v1586_v36  ;;  %v1595_v60 = vld [vmem:[#allocation7 + $0x130] sm:$0xff]  ;;  %v1622_v35 = vld [vmem:[#allocation7 + $0x208] sm:$0xff]  ;;  %v1624_v36 = vld [vmem:[#allocation7 + $0x218] sm:$0xff] }
 0x30c   :  { %2732 = vmatpush1.bf16.msra.mxu0 %v2731_v52  ;;  %2764 = vmatpush1.bf16.msra.mxu1 %v2763_v53  ;;  %v1213_v52 = vld [vmem:[#allocation6 + $0x3b0] sm:$0xff] }
 0x30d   :  { %2734 = vmatprep.subr.bf16.mxu0 %v2733_v57  ;;  %2766 = vmatprep.subr.bf16.mxu1 %v2765_v58  ;;  %v1221_v53 = vld [vmem:[#allocation6 + $0x3f0] sm:$0xff]  ;;  %v2751_v57 = vpack.c.bf16 %v1219_v51, %v1211_v46  ;;  %v1590_v46 = vld [vmem:[#allocation7 + $0x108] sm:$0xff] }
 0x30e   :  { %v2783_v58 = vpack.c.bf16 %v1221_v53, %v1213_v52  ;;  %v1589_v52 = vld [vmem:[#allocation7 + $0x100] sm:$0xff]  ;;  %v1591_v53 = vld [vmem:[#allocation7 + $0x110] sm:$0xff] }
 0x30f   :  { %v1611_v18 = vld [vmem:[#allocation7 + $0x1b0] sm:$0xff] }
 0x310   :  { %2736 = vmatpush1.bf16.msra.mxu0 %v2735_v1  ;;  %2768 = vmatpush1.bf16.msra.mxu1 %v2767_v3  ;;  %v2789_v1 = vpack.c.bf16 %v1564_v63, %v1562_v62  ;;  %v1561_v3 = vld [vmem:[#allocation7 + $0x20] sm:$0xff]  ;;  %v1600_v62 = vld [vmem:[#allocation7 + $0x158] sm:$0xff]  ;;  %v1619_v34 = vld [vmem:[#allocation7 + $0x1f0] sm:$0xff] }
 0x311   :  { %2738 = vmatprep.subr.bf16.mxu0 %v2737_v5  ;;  %2770 = vmatprep.subr.bf16.mxu1 %v2769_v6  ;;  %v1568_v5 = vld [vmem:[#allocation7 + $0x58] sm:$0xff]  ;;  %v2791_v6 = vpack.c.bf16 %v1563_v2, %v1561_v3  ;;  %v1599_v3 = vld [vmem:[#allocation7 + $0x150] sm:$0xff]  ;;  %v1602_v2 = vld [vmem:[#allocation7 + $0x168] sm:$0xff] }
 0x312   :  { %v2793_v7 = vpack.c.bf16 %v1568_v5, %v1566_v4  ;;  %v1604_v4 = vld [vmem:[#allocation7 + $0x178] sm:$0xff] }
 0x314   :  { %2740 = vmatpush1.bf16.msra.mxu0 %v2739_v12  ;;  %2772 = vmatpush1.bf16.msra.mxu1 %v2771_v13  ;;  %v2797_v12 = vpack.c.bf16 %v1572_v10, %v1570_v31  ;;  %v1569_v13 = vld [vmem:[#allocation7 + $0x60] sm:$0xff]  ;;  %v1608_v31 = vld [vmem:[#allocation7 + $0x198] sm:$0xff] }
 0x315   :  { %2742 = vmatprep.subr.bf16.mxu0 %v2741_v16  ;;  %2774 = vmatprep.subr.bf16.mxu1 %v2773_v17  ;;  %v1576_v16 = vld [vmem:[#allocation7 + $0x98] sm:$0xff]  ;;  %v2799_v17 = vpack.c.bf16 %v1571_v14, %v1569_v13  ;;  %v1607_v13 = vld [vmem:[#allocation7 + $0x190] sm:$0xff]  ;;  %v1610_v14 = vld [vmem:[#allocation7 + $0x1a8] sm:$0xff] }
 0x318   :  { %2744 = vmatpush1.bf16.msra.mxu0 %v2743_v25  ;;  %2776 = vmatpush1.bf16.msra.mxu1 %v2775_v26  ;;  %v1577_v25 = vld [vmem:[#allocation7 + $0xa0] sm:$0xff]  ;;  %v1579_v26 = vld [vmem:[#allocation7 + $0xb0] sm:$0xff] }
 0x319   :  { %2746 = vmatprep.subr.bf16.mxu0 %v2745_v29  ;;  %2778 = vmatprep.subr.bf16.mxu1 %v2777_v33  ;;  %v2807_v29 = vpack.c.bf16 %v1579_v26, %v1577_v25  ;;  %v2809_v33 = vpack.c.bf16 %v1584_v28, %v1582_v27  ;;  %v1615_v25 = vld [vmem:[#allocation7 + $0x1d0] sm:$0xff]  ;;  %v1618_v26 = vld [vmem:[#allocation7 + $0x1e8] sm:$0xff]  ;;  %v1620_v27 = vld [vmem:[#allocation7 + $0x1f8] sm:$0xff] }
 0x31c   :  { %2748 = vmatpush1.bf16.msra.mxu0 %v2747_v42  ;;  %2780 = vmatpush1.bf16.msra.mxu1 %v2779_v45  ;;  %v1585_v42 = vld [vmem:[#allocation7 + $0xe0] sm:$0xff]  ;;  %v1587_v45 = vld [vmem:[#allocation7 + $0xf0] sm:$0xff] }
 0x31d   :  { %2750 = vmatprep.subr.bf16.mxu0 %v2749_v47  ;;  %2782 = vmatprep.subr.bf16.mxu1 %v2781_v50  ;;  %v1592_v47 = vld [vmem:[#allocation7 + $0x118] sm:$0xff]  ;;  %v2815_v50 = vpack.c.bf16 %v1587_v45, %v1585_v42 }
 0x31e   :  { %v2817_v51 = vpack.c.bf16 %v1592_v47, %v1590_v46 }
 0x320   :  { %2752 = vmatpush1.bf16.msra.mxu0 %v2751_v57  ;;  %2784 = vmatpush1.bf16.msra.mxu1 %v2783_v58  ;;  %v2819_v57 = vpack.c.bf16 %v1591_v53, %v1589_v52  ;;  %v2821_v58 = vpack.c.bf16 %v1596_v56, %v1594_v54  ;;  %v1621_v54 = vld [vmem:[#allocation7 + $0x200] sm:$0xff]  ;;  %v1623_v56 = vld [vmem:[#allocation7 + $0x210] sm:$0xff] }
 0x321   :  { %2786 = vmatprep.subr.bf16.mxu0 %v2785_v59  ;;  %v1593_v59 = vld [vmem:[#allocation7 + $0x120] sm:$0xff] }
 0x322   :  { %v2823_v63 = vpack.c.bf16 %v1595_v60, %v1593_v59  ;;  %v1626_v59 = vld [vmem:[#allocation7 + $0x228] sm:$0xff]  ;;  %v1628_v60 = vld [vmem:[#allocation7 + $0x238] sm:$0xff] }
 0x323   :  { %1472 = vmatmul.mubr.f32.vlgmr.msra.gmra.mrb[6].mxu0 %v3343_v22  ;;  %1543 = vmatmul.mubr.f32.vlgmr.msra.gmra.mrb[14].mxu1 %v3343_v22  ;;  %v2801_v22 = vpack.c.bf16 %v1576_v16, %v1574_v15  ;;  %v1612_v15 = vld [vmem:[#allocation7 + $0x1b8] sm:$0xff] }
 0x324   :  { %2788 = vmatpush1.bf16.msra.mxu0 %v2787_v0  ;;  %v2825_v0 = vpack.c.bf16 %v1600_v62, %v1598_v61  ;;  %v2851_v62 = vpack.c.bf16 %v1623_v56, %v1621_v54 }
 0x325   :  { %2790 = vmatprep.subr.bf16.mxu0 %v2789_v1  ;;  %v1597_v1 = vld [vmem:[#allocation7 + $0x140] sm:$0xff] }
 0x326   :  { %v2827_v5 = vpack.c.bf16 %v1599_v3, %v1597_v1  ;;  %v1625_v1 = vld [vmem:[#allocation7 + $0x220] sm:$0xff]  ;;  %v1627_v3 = vld [vmem:[#allocation7 + $0x230] sm:$0xff] }
 0x328   :  { %2792 = vmatpush1.bf16.msra.mxu0 %v2791_v6  ;;  %v2829_v6 = vpack.c.bf16 %v1604_v4, %v1602_v2  ;;  %v1632_v4 = vld [vmem:[#allocation7 + $0x258] sm:$0xff] }
 0x329   :  { %2794 = vmatprep.subr.bf16.mxu0 %v2793_v7  ;;  %v1601_v7 = vld [vmem:[#allocation7 + $0x160] sm:$0xff] }
 0x32a   :  { %v2831_v10 = vpack.c.bf16 %v1603_v8, %v1601_v7  ;;  %v1629_v7 = vld [vmem:[#allocation7 + $0x240] sm:$0xff]  ;;  %v1631_v8 = vld [vmem:[#allocation7 + $0x250] sm:$0xff] }
 0x32c   :  { %2796 = vmatpush1.bf16.msra.mxu0 %v2795_v11  ;;  %v2833_v11 = vpack.c.bf16 %v1608_v31, %v1606_v9  ;;  %v1634_v9 = vld [vmem:[#allocation7 + $0x268] sm:$0xff]  ;;  %v1636_v31 = vld [vmem:[#allocation7 + $0x278] sm:$0xff] }
 0x32d   :  { %2798 = vmatprep.subr.bf16.mxu0 %v2797_v12  ;;  %v1605_v12 = vld [vmem:[#allocation7 + $0x180] sm:$0xff] }
 0x32e   :  { %v2835_v16 = vpack.c.bf16 %v1607_v13, %v1605_v12  ;;  %v1633_v12 = vld [vmem:[#allocation7 + $0x260] sm:$0xff]  ;;  %v1635_v13 = vld [vmem:[#allocation7 + $0x270] sm:$0xff] }
 0x330   :  { %2800 = vmatpush1.bf16.msra.mxu0 %v2799_v17  ;;  %v2837_v17 = vpack.c.bf16 %v1612_v15, %v1610_v14  ;;  %v1638_v14 = vld [vmem:[#allocation7 + $0x288] sm:$0xff]  ;;  %v1640_v15 = vld [vmem:[#allocation7 + $0x298] sm:$0xff] }
 0x331   :  { %2802 = vmatprep.subr.bf16.mxu0 %v2801_v22  ;;  %v1609_v22 = vld [vmem:[#allocation7 + $0x1a0] sm:$0xff] }
 0x332   :  { %v2839_v21 = vpack.c.bf16 %v1611_v18, %v1609_v22  ;;  %v1637_v22 = vld [vmem:[#allocation7 + $0x280] sm:$0xff]  ;;  %v1639_v18 = vld [vmem:[#allocation7 + $0x290] sm:$0xff] }
 0x334   :  { %2804 = vmatpush1.bf16.msra.mxu0 %v2803_v23  ;;  %v2841_v23 = vpack.c.bf16 %v1616_v20, %v1614_v19  ;;  %v1642_v19 = vld [vmem:[#allocation7 + $0x2a8] sm:$0xff]  ;;  %v1644_v20 = vld [vmem:[#allocation7 + $0x2b8] sm:$0xff] }
 0x335   :  { %2806 = vmatprep.subr.bf16.mxu0 %v2805_v40  ;;  %v1613_v40 = vld [vmem:[#allocation7 + $0x1c0] sm:$0xff] }
 0x336   :  { %v2843_v28 = vpack.c.bf16 %v1615_v25, %v1613_v40  ;;  %v1641_v40 = vld [vmem:[#allocation7 + $0x2a0] sm:$0xff]  ;;  %v1643_v25 = vld [vmem:[#allocation7 + $0x2b0] sm:$0xff] }
 0x338   :  { %2808 = vmatpush1.bf16.msra.mxu0 %v2807_v29  ;;  %v2845_v29 = vpack.c.bf16 %v1620_v27, %v1618_v26  ;;  %v1646_v26 = vld [vmem:[#allocation7 + $0x2c8] sm:$0xff]  ;;  %v1648_v27 = vld [vmem:[#allocation7 + $0x2d8] sm:$0xff] }
 0x339   :  { %2810 = vmatprep.subr.bf16.mxu0 %v2809_v33  ;;  %v1617_v33 = vld [vmem:[#allocation7 + $0x1e0] sm:$0xff] }
 0x33a   :  { %v2847_v37 = vpack.c.bf16 %v1619_v34, %v1617_v33  ;;  %v1645_v33 = vld [vmem:[#allocation7 + $0x2c0] sm:$0xff]  ;;  %v1647_v34 = vld [vmem:[#allocation7 + $0x2d0] sm:$0xff] }
 0x33c   :  { %2812 = vmatpush1.bf16.msra.mxu0 %v2811_v38  ;;  %v2849_v38 = vpack.c.bf16 %v1624_v36, %v1622_v35  ;;  %v1650_v35 = vld [vmem:[#allocation7 + $0x2e8] sm:$0xff]  ;;  %v1652_v36 = vld [vmem:[#allocation7 + $0x2f8] sm:$0xff] }
 0x33d   :  { %2814 = vmatprep.subr.bf16.mxu0 %v2813_v39  ;;  %v3352_v39 = vld [vmem:[%s3408_s6] sm:$0xff] }
 0x33e   :  { %v1228_v42 = vrot.slane %v3352_v39, %v3299_v30  ;;  %v1232_v45 = vrot.slane %v3352_v39, %v3307_v32  ;;  %v1240_v46 = vrot.slane %v3352_v39, %v361_v49  ;;  %v1630_v49 = vld [vmem:[#allocation7 + $0x248] sm:$0xff] }
 0x340   :  { %2816 = vmatpush1.bf16.msra.mxu0 %v2815_v50 }
 0x341   :  { %2818 = vmatprep.subr.bf16.mxu0 %v2817_v51 }
 0x344   :  { %2820 = vmatpush1.bf16.msra.mxu0 %v2819_v57 }
 0x345   :  { %2822 = vmatprep.subr.bf16.mxu0 %v2821_v58 }
 0x348   :  { %2824 = vmatpush1.bf16.msra.mxu0 %v2823_v63 }
 0x349   :  { %2826 = vmatprep.subr.bf16.mxu0 %v2825_v0  ;;  %v2853_v0 = vpack.c.bf16 %v1628_v60, %v1626_v59  ;;  %v1655_v59 = vld [vmem:[#allocation7 + $0x310] sm:$0xff]  ;;  %v1658_v60 = vld [vmem:[#allocation7 + $0x328] sm:$0xff] }
 0x34c   :  { %2828 = vmatpush1.bf16.msra.mxu0 %v2827_v5  ;;  %v2855_v5 = vpack.c.bf16 %v1627_v3, %v1625_v1  ;;  %v1659_v1 = vld [vmem:[#allocation7 + $0x330] sm:$0xff]  ;;  %v1662_v3 = vld [vmem:[#allocation7 + $0x348] sm:$0xff] }
 0x34d   :  { %2830 = vmatprep.subr.bf16.mxu0 %v2829_v6  ;;  %v2857_v6 = vpack.c.bf16 %v1632_v4, %v1630_v49 }
 0x350   :  { %2832 = vmatpush1.bf16.msra.mxu0 %v2831_v10  ;;  %v2859_v10 = vpack.c.bf16 %v1631_v8, %v1629_v7  ;;  %v1666_v7 = vld [vmem:[#allocation7 + $0x368] sm:$0xff]  ;;  %v1668_v8 = vld [vmem:[#allocation7 + $0x378] sm:$0xff] }
 0x351   :  { %2834 = vmatprep.subr.bf16.mxu0 %v2833_v11  ;;  %v2861_v11 = vpack.c.bf16 %v1636_v31, %v1634_v9  ;;  %v2893_v31 = vpack.c.bf16 %v1668_v8, %v1666_v7  ;;  %v1698_v7 = vld [vmem:[#allocation7 + $0x468] sm:$0xff]  ;;  %v1700_v8 = vld [vmem:[#allocation7 + $0x478] sm:$0xff] }
 0x354   :  { %2836 = vmatpush1.bf16.msra.mxu0 %v2835_v16  ;;  %v2863_v16 = vpack.c.bf16 %v1635_v13, %v1633_v12  ;;  %v1670_v12 = vld [vmem:[#allocation7 + $0x388] sm:$0xff]  ;;  %v1672_v13 = vld [vmem:[#allocation7 + $0x398] sm:$0xff] }
 0x355   :  { %2838 = vmatprep.subr.bf16.mxu0 %v2837_v17  ;;  %v2865_v17 = vpack.c.bf16 %v1640_v15, %v1638_v14  ;;  %v2897_v15 = vpack.c.bf16 %v1672_v13, %v1670_v12  ;;  %v1702_v12 = vld [vmem:[#allocation7 + $0x488] sm:$0xff]  ;;  %v1704_v13 = vld [vmem:[#allocation7 + $0x498] sm:$0xff] }
 0x358   :  { %2840 = vmatpush1.bf16.msra.mxu0 %v2839_v21  ;;  %v2867_v21 = vpack.c.bf16 %v1639_v18, %v1637_v22  ;;  %v1674_v22 = vld [vmem:[#allocation7 + $0x3a8] sm:$0xff]  ;;  %v1676_v18 = vld [vmem:[#allocation7 + $0x3b8] sm:$0xff] }
 0x359   :  { %2842 = vmatprep.subr.bf16.mxu0 %v2841_v23  ;;  %v2869_v23 = vpack.c.bf16 %v1644_v20, %v1642_v19  ;;  %v2901_v20 = vpack.c.bf16 %v1676_v18, %v1674_v22  ;;  %v1706_v22 = vld [vmem:[#allocation7 + $0x4a8] sm:$0xff]  ;;  %v1708_v18 = vld [vmem:[#allocation7 + $0x4b8] sm:$0xff] }
 0x35c   :  { %2844 = vmatpush1.bf16.msra.mxu0 %v2843_v28  ;;  %v2871_v28 = vpack.c.bf16 %v1643_v25, %v1641_v40  ;;  %v1678_v40 = vld [vmem:[#allocation7 + $0x3c8] sm:$0xff]  ;;  %v1680_v25 = vld [vmem:[#allocation7 + $0x3d8] sm:$0xff] }
 0x35d   :  { %2846 = vmatprep.subr.bf16.mxu0 %v2845_v29  ;;  %v2873_v29 = vpack.c.bf16 %v1648_v27, %v1646_v26  ;;  %v2905_v27 = vpack.c.bf16 %v1680_v25, %v1678_v40  ;;  %v1710_v40 = vld [vmem:[#allocation7 + $0x4c8] sm:$0xff]  ;;  %v1712_v25 = vld [vmem:[#allocation7 + $0x4d8] sm:$0xff] }
 0x360   :  { %2848 = vmatpush1.bf16.msra.mxu0 %v2847_v37  ;;  %v2875_v37 = vpack.c.bf16 %v1647_v34, %v1645_v33  ;;  %v1682_v33 = vld [vmem:[#allocation7 + $0x3e8] sm:$0xff]  ;;  %v1684_v34 = vld [vmem:[#allocation7 + $0x3f8] sm:$0xff] }
 0x361   :  { %2850 = vmatprep.subr.bf16.mxu0 %v2849_v38  ;;  %v2877_v38 = vpack.c.bf16 %v1652_v36, %v1650_v35  ;;  %v1236_v36 = vrot.slane %v3352_v39, %v357_v48 }
 0x3d6   :  { %v1331_v47 = vpop.f32.mrb[4].mxu0  ;;  %v3361_v50 = vpop.f32.mrb[12].mxu1 }
 0x3d7   :  { %v1332_v51 = vadd.f32 %v1331_v47, %v1228_v42  ;;  %v1333_v52 = vpop.f32.mrb[5].mxu0  ;;  %v1404_v53 = vpop.f32.mrb[13].mxu1  ;;  %v1649_v42 = vld [vmem:[#allocation7 + $0x2e0] sm:$0xff]  ;;  %v1656_v47 = vld [vmem:[#allocation7 + $0x318] sm:$0xff] }
 0x3d8   :  { %v1334_v57 = vadd.f32 %v1333_v52, %v1232_v45  ;;  %v1405_v58 = vadd.f32 %v1404_v53, %v1240_v46  ;;  %v1651_v45 = vld [vmem:[#allocation7 + $0x2f0] sm:$0xff]  ;;  %v1654_v46 = vld [vmem:[#allocation7 + $0x308] sm:$0xff] }
 0x3d9   :  { %v1549_v63 = vmax.f32 %v1332_v51, 0.0  ;;  %v2879_v53 = vpack.c.bf16 %v1651_v45, %v1649_v42  ;;  %v1683_v42 = vld [vmem:[#allocation7 + $0x3f0] sm:$0xff]  ;;  %v1248_v45 = vrot.slane %v3352_v39, %v369_v44  ;;  %v1689_v44 = vld [vmem:[#allocation7 + $0x420] sm:$0xff] }
 0x3da   :  { %v1550_v61 = vmax.f32 %v1334_v57, 0.0  ;;  %v1552_v2 = vmax.f32 %v1405_v58, 0.0  ;;  %v2881_v57 = vpack.c.bf16 %v1656_v47, %v1654_v46  ;;  %v1653_v58 = vld [vmem:[#allocation7 + $0x300] sm:$0xff]  ;;  %v1686_v46 = vld [vmem:[#allocation7 + $0x408] sm:$0xff]  ;;  %v1688_v47 = vld [vmem:[#allocation7 + $0x418] sm:$0xff] }
 0x3dc   :  { %1889 = vmatprep.mubr.f32.mxu0 %v1550_v61  ;;  %v1660_v61 = vld [vmem:[#allocation7 + $0x338] sm:$0xff] }
 0x3dd   :  { %1890 = vmatmul.mubr.f32.vlgmr.msra.gmra.mrb[8].mxu0 %v1549_v63  ;;  %v2885_v63 = vpack.c.bf16 %v1660_v61, %v1658_v60  ;;  %v1687_v60 = vld [vmem:[#allocation7 + $0x410] sm:$0xff]  ;;  %v1690_v61 = vld [vmem:[#allocation7 + $0x428] sm:$0xff] }
 0x3de   :  { %2852 = vmatpush1.bf16.msra.mxu0 %v2851_v62  ;;  %1960 = vmatprep.mubr.f32.mxu0 %v1552_v2  ;;  %v2883_v62 = vpack.c.bf16 %v1655_v59, %v1653_v58  ;;  %v1664_v2 = vld [vmem:[#allocation7 + $0x358] sm:$0xff]  ;;  %v2913_v58 = vpack.c.bf16 %v1688_v47, %v1686_v46  ;;  %v1685_v59 = vld [vmem:[#allocation7 + $0x400] sm:$0xff] }
 0x3df   :  { %2854 = vmatprep.subr.bf16.mxu0 %v2853_v0  ;;  %v1657_v0 = vld [vmem:[#allocation7 + $0x320] sm:$0xff]  ;;  %v2889_v4 = vpack.c.bf16 %v1664_v2, %v1662_v3  ;;  %v1691_v3 = vld [vmem:[#allocation7 + $0x430] sm:$0xff] }
 0x3e0   :  { %v2887_v49 = vpack.c.bf16 %v1659_v1, %v1657_v0 }
 0x3e2   :  { %2856 = vmatpush1.bf16.msra.mxu0 %v2855_v5  ;;  %v1661_v5 = vld [vmem:[#allocation7 + $0x340] sm:$0xff] }
 0x3e3   :  { %2858 = vmatprep.subr.bf16.mxu0 %v2857_v6  ;;  %v1663_v6 = vld [vmem:[#allocation7 + $0x350] sm:$0xff] }
 0x3e4   :  { %v2891_v9 = vpack.c.bf16 %v1663_v6, %v1661_v5  ;;  %v1693_v6 = vld [vmem:[#allocation7 + $0x440] sm:$0xff] }
 0x3e6   :  { %2860 = vmatpush1.bf16.msra.mxu0 %v2859_v10  ;;  %v1665_v10 = vld [vmem:[#allocation7 + $0x360] sm:$0xff] }
 0x3e7   :  { %2862 = vmatprep.subr.bf16.mxu0 %v2861_v11  ;;  %v1667_v11 = vld [vmem:[#allocation7 + $0x370] sm:$0xff] }
 0x3e8   :  { %v2895_v14 = vpack.c.bf16 %v1667_v11, %v1665_v10  ;;  %v1697_v10 = vld [vmem:[#allocation7 + $0x460] sm:$0xff]  ;;  %v1699_v11 = vld [vmem:[#allocation7 + $0x470] sm:$0xff] }
 0x3ea   :  { %2864 = vmatpush1.bf16.msra.mxu0 %v2863_v16  ;;  %v1669_v16 = vld [vmem:[#allocation7 + $0x380] sm:$0xff] }
 0x3eb   :  { %2866 = vmatprep.subr.bf16.mxu0 %v2865_v17  ;;  %v1671_v17 = vld [vmem:[#allocation7 + $0x390] sm:$0xff] }
 0x3ec   :  { %v2899_v19 = vpack.c.bf16 %v1671_v17, %v1669_v16  ;;  %v1701_v16 = vld [vmem:[#allocation7 + $0x480] sm:$0xff]  ;;  %v1703_v17 = vld [vmem:[#allocation7 + $0x490] sm:$0xff] }
 0x3ee   :  { %2868 = vmatpush1.bf16.msra.mxu0 %v2867_v21  ;;  %v1673_v21 = vld [vmem:[#allocation7 + $0x3a0] sm:$0xff] }
 0x3ef   :  { %2870 = vmatprep.subr.bf16.mxu0 %v2869_v23  ;;  %v1675_v23 = vld [vmem:[#allocation7 + $0x3b0] sm:$0xff] }
 0x3f0   :  { %v2903_v26 = vpack.c.bf16 %v1675_v23, %v1673_v21  ;;  %v1705_v21 = vld [vmem:[#allocation7 + $0x4a0] sm:$0xff]  ;;  %v1707_v23 = vld [vmem:[#allocation7 + $0x4b0] sm:$0xff] }
 0x3f2   :  { %2872 = vmatpush1.bf16.msra.mxu0 %v2871_v28  ;;  %v1677_v28 = vld [vmem:[#allocation7 + $0x3c0] sm:$0xff] }
 0x3f3   :  { %2874 = vmatprep.subr.bf16.mxu0 %v2873_v29  ;;  %v1679_v29 = vld [vmem:[#allocation7 + $0x3d0] sm:$0xff] }
 0x3f4   :  { %v2907_v35 = vpack.c.bf16 %v1679_v29, %v1677_v28  ;;  %v1709_v28 = vld [vmem:[#allocation7 + $0x4c0] sm:$0xff]  ;;  %v1711_v29 = vld [vmem:[#allocation7 + $0x4d0] sm:$0xff] }
 0x3f6   :  { %v3363_v51 = vpop.f32.mrb[6].mxu0  ;;  %v3365_v52 = vpop.f32.mrb[14].mxu1  ;;  %2876 = vmatpush1.bf16.msra.mxu0 %v2875_v37  ;;  %v2909_v37 = vpack.c.bf16 %v1684_v34, %v1682_v33  ;;  %v1714_v33 = vld [vmem:[#allocation7 + $0x4e8] sm:$0xff]  ;;  %v1716_v34 = vld [vmem:[#allocation7 + $0x4f8] sm:$0xff] }
 0x3f7   :  { %v3367_v54 = vpop.f32.mrb[7].mxu0  ;;  %v3369_v56 = vpop.f32.mrb[15].mxu1  ;;  %2878 = vmatprep.subr.bf16.mxu0 %v2877_v38  ;;  %v1681_v38 = vld [vmem:[#allocation7 + $0x3e0] sm:$0xff] }
 0x3f8   :  { %v1476_v48 = vadd.f32 %v3367_v54, %v1248_v45  ;;  %v1695_v54 = vld [vmem:[#allocation7 + $0x450] sm:$0xff]  ;;  %v1720_v45 = vld [vmem:[#allocation7 + $0x518] sm:$0xff] }
 0x3fa   :  { %2880 = vmatpush1.bf16.msra.mxu0 %v2879_v53  ;;  %v2911_v53 = vpack.c.bf16 %v1683_v42, %v1681_v38  ;;  %v1554_v2 = vmax.f32 %v1476_v48, 0.0  ;;  %v1715_v38 = vld [vmem:[#allocation7 + $0x4f0] sm:$0xff]  ;;  %v1718_v42 = vld [vmem:[#allocation7 + $0x508] sm:$0xff] }
 0x3fb   :  { %2882 = vmatprep.subr.bf16.mxu0 %v2881_v57  ;;  %v1403_v57 = vadd.f32 %v3361_v50, %v1236_v36  ;;  %v2919_v50 = vpack.c.bf16 %v1691_v3, %v1689_v44  ;;  %v2941_v36 = vpack.c.bf16 %v1716_v34, %v1714_v33  ;;  %v2945_v47 = vpack.c.bf16 %v1720_v45, %v1718_v42  ;;  %v1725_v3 = vld [vmem:[#allocation7 + $0x540] sm:$0xff]  ;;  %v1747_v33 = vld [vmem:[#allocation7 + $0x5f0] sm:$0xff] }
 0x3fc   :  { %v1256_v34 = vrot.slane %v3352_v39, %v377_v55  ;;  %v1749_v45 = vld [vmem:[#allocation7 + $0x600] sm:$0xff] }
 0x3fd   :  { %v1551_v0 = vmax.f32 %v1403_v57, 0.0  ;;  %v1719_v57 = vld [vmem:[#allocation7 + $0x510] sm:$0xff]  ;;  %v1753_v55 = vld [vmem:[#allocation7 + $0x620] sm:$0xff] }
 0x3fe   :  { %2884 = vmatpush1.bf16.msra.mxu0 %v2883_v62  ;;  %v1692_v62 = vld [vmem:[#allocation7 + $0x438] sm:$0xff] }
 0x3ff   :  { %2886 = vmatprep.subr.bf16.mxu0 %v2885_v63  ;;  %v2915_v63 = vpack.c.bf16 %v1687_v60, %v1685_v59  ;;  %v2917_v1 = vpack.c.bf16 %v1692_v62, %v1690_v61  ;;  %v1724_v59 = vld [vmem:[#allocation7 + $0x538] sm:$0xff]  ;;  %v1721_v61 = vld [vmem:[#allocation7 + $0x520] sm:$0xff]  ;;  %v1723_v62 = vld [vmem:[#allocation7 + $0x530] sm:$0xff] }
 0x402   :  { %2888 = vmatpush1.bf16.msra.mxu0 %v2887_v49  ;;  %v1694_v49 = vld [vmem:[#allocation7 + $0x448] sm:$0xff] }
 0x403   :  { %2890 = vmatprep.subr.bf16.mxu0 %v2889_v4  ;;  %v1696_v4 = vld [vmem:[#allocation7 + $0x458] sm:$0xff] }
 0x404   :  { %v2921_v5 = vpack.c.bf16 %v1696_v4, %v1694_v49  ;;  %v1730_v49 = vld [vmem:[#allocation7 + $0x568] sm:$0xff]  ;;  %v1732_v4 = vld [vmem:[#allocation7 + $0x578] sm:$0xff] }
 0x406   :  { %2892 = vmatpush1.bf16.msra.mxu0 %v2891_v9  ;;  %v2923_v9 = vpack.c.bf16 %v1695_v54, %v1693_v6  ;;  %v1729_v6 = vld [vmem:[#allocation7 + $0x560] sm:$0xff]  ;;  %v1731_v54 = vld [vmem:[#allocation7 + $0x570] sm:$0xff] }
 0x407   :  { %2894 = vmatprep.subr.bf16.mxu0 %v2893_v31  ;;  %v2925_v31 = vpack.c.bf16 %v1700_v8, %v1698_v7  ;;  %v1734_v7 = vld [vmem:[#allocation7 + $0x588] sm:$0xff]  ;;  %v1736_v8 = vld [vmem:[#allocation7 + $0x598] sm:$0xff] }
 0x40a   :  { %2896 = vmatpush1.bf16.msra.mxu0 %v2895_v14  ;;  %v2927_v14 = vpack.c.bf16 %v1699_v11, %v1697_v10  ;;  %v1733_v10 = vld [vmem:[#allocation7 + $0x580] sm:$0xff]  ;;  %v1735_v11 = vld [vmem:[#allocation7 + $0x590] sm:$0xff] }
 0x40b   :  { %2898 = vmatprep.subr.bf16.mxu0 %v2897_v15  ;;  %v2929_v15 = vpack.c.bf16 %v1704_v13, %v1702_v12  ;;  %v1738_v12 = vld [vmem:[#allocation7 + $0x5a8] sm:$0xff]  ;;  %v1740_v13 = vld [vmem:[#allocation7 + $0x5b8] sm:$0xff] }
 0x40e   :  { %2900 = vmatpush1.bf16.msra.mxu0 %v2899_v19  ;;  %v2931_v19 = vpack.c.bf16 %v1703_v17, %v1701_v16  ;;  %v1737_v16 = vld [vmem:[#allocation7 + $0x5a0] sm:$0xff]  ;;  %v1739_v17 = vld [vmem:[#allocation7 + $0x5b0] sm:$0xff] }
 0x40f   :  { %2902 = vmatprep.subr.bf16.mxu0 %v2901_v20  ;;  %v2933_v20 = vpack.c.bf16 %v1708_v18, %v1706_v22  ;;  %v1742_v22 = vld [vmem:[#allocation7 + $0x5c8] sm:$0xff]  ;;  %v1744_v18 = vld [vmem:[#allocation7 + $0x5d8] sm:$0xff] }
 0x412   :  { %2904 = vmatpush1.bf16.msra.mxu0 %v2903_v26  ;;  %v2935_v26 = vpack.c.bf16 %v1707_v23, %v1705_v21  ;;  %v1741_v21 = vld [vmem:[#allocation7 + $0x5c0] sm:$0xff]  ;;  %v1743_v23 = vld [vmem:[#allocation7 + $0x5d0] sm:$0xff] }
 0x413   :  { %2906 = vmatprep.subr.bf16.mxu0 %v2905_v27  ;;  %v2937_v27 = vpack.c.bf16 %v1712_v25, %v1710_v40  ;;  %v1746_v40 = vld [vmem:[#allocation7 + $0x5e8] sm:$0xff]  ;;  %v1748_v25 = vld [vmem:[#allocation7 + $0x5f8] sm:$0xff] }
 0x416   :  { %2908 = vmatpush1.bf16.msra.mxu0 %v2907_v35  ;;  %v2939_v35 = vpack.c.bf16 %v1711_v29, %v1709_v28  ;;  %v2973_v28 = vpack.c.bf16 %v1748_v25, %v1746_v40  ;;  %v1745_v29 = vld [vmem:[#allocation7 + $0x5e0] sm:$0xff]  ;;  %v1779_v25 = vld [vmem:[#allocation7 + $0x6f0] sm:$0xff] }
 0x417   :  { %2910 = vmatprep.subr.bf16.mxu0 %v2909_v37  ;;  %v1713_v37 = vld [vmem:[#allocation7 + $0x4e0] sm:$0xff] }
 0x418   :  { %v2943_v46 = vpack.c.bf16 %v1715_v38, %v1713_v37  ;;  %v2975_v37 = vpack.c.bf16 %v1747_v33, %v1745_v29  ;;  %v1777_v40 = vld [vmem:[#allocation7 + $0x6e0] sm:$0xff] }
 0x419   :  { %v1781_v33 = vld [vmem:[#allocation7 + $0x700] sm:$0xff] }
 0x41a   :  { %2912 = vmatpush1.bf16.msra.mxu0 %v2911_v53  ;;  %v1717_v53 = vld [vmem:[#allocation7 + $0x500] sm:$0xff] }
 0x41b   :  { %2914 = vmatprep.subr.bf16.mxu0 %v2913_v58  ;;  %v1722_v58 = vld [vmem:[#allocation7 + $0x528] sm:$0xff]  ;;  %v2947_v60 = vpack.c.bf16 %v1719_v57, %v1717_v53  ;;  %v1756_v53 = vld [vmem:[#allocation7 + $0x638] sm:$0xff] }
 0x41c   :  { %v2949_v48 = vpack.c.bf16 %v1724_v59, %v1722_v58 }
 0x41d   :  { %1961 = vmatmul.mubr.f32.vlgmr.msra.gmra.mrb[8].mxu0 %v1551_v0  ;;  %v1728_v0 = vld [vmem:[#allocation7 + $0x558] sm:$0xff] }
 0x41e   :  { %2916 = vmatpush1.bf16.msra.mxu0 %v2915_v63  ;;  %2031 = vmatprep.mubr.f32.mxu0 %v1554_v2  ;;  %v1726_v63 = vld [vmem:[#allocation7 + $0x548] sm:$0xff]  ;;  %v1727_v2 = vld [vmem:[#allocation7 + $0x550] sm:$0xff] }
 0x41f   :  { %2918 = vmatprep.subr.bf16.mxu0 %v2917_v1  ;;  %v2951_v1 = vpack.c.bf16 %v1723_v62, %v1721_v61  ;;  %v2953_v44 = vpack.c.bf16 %v1728_v0, %v1726_v63  ;;  %v1758_v61 = vld [vmem:[#allocation7 + $0x648] sm:$0xff]  ;;  %v1760_v62 = vld [vmem:[#allocation7 + $0x658] sm:$0xff]  ;;  %v1757_v0 = vld [vmem:[#allocation7 + $0x640] sm:$0xff] }
 0x420   :  { %v2985_v63 = vpack.c.bf16 %v1760_v62, %v1758_v61  ;;  %v1793_v61 = vld [vmem:[#allocation7 + $0x760] sm:$0xff]  ;;  %v1795_v62 = vld [vmem:[#allocation7 + $0x770] sm:$0xff] }
 0x422   :  { %2920 = vmatpush1.bf16.msra.mxu0 %v2919_v50  ;;  %v2955_v50 = vpack.c.bf16 %v1727_v2, %v1725_v3 }
 0x423   :  { %2922 = vmatprep.subr.bf16.mxu0 %v2921_v5  ;;  %v2957_v5 = vpack.c.bf16 %v1732_v4, %v1730_v49  ;;  %v1761_v49 = vld [vmem:[#allocation7 + $0x660] sm:$0xff]  ;;  %v1763_v4 = vld [vmem:[#allocation7 + $0x670] sm:$0xff] }
 0x426   :  { %2924 = vmatpush1.bf16.msra.mxu0 %v2923_v9  ;;  %v2959_v9 = vpack.c.bf16 %v1731_v54, %v1729_v6  ;;  %v2991_v6 = vpack.c.bf16 %v1763_v4, %v1761_v49 }
 0x427   :  { %2926 = vmatprep.subr.bf16.mxu0 %v2925_v31  ;;  %v2961_v31 = vpack.c.bf16 %v1736_v8, %v1734_v7  ;;  %v1765_v7 = vld [vmem:[#allocation7 + $0x680] sm:$0xff]  ;;  %v1767_v8 = vld [vmem:[#allocation7 + $0x690] sm:$0xff] }
 0x42a   :  { %2928 = vmatpush1.bf16.msra.mxu0 %v2927_v14  ;;  %v2963_v14 = vpack.c.bf16 %v1735_v11, %v1733_v10  ;;  %v2995_v10 = vpack.c.bf16 %v1767_v8, %v1765_v7 }
 0x42b   :  { %2930 = vmatprep.subr.bf16.mxu0 %v2929_v15  ;;  %v2965_v15 = vpack.c.bf16 %v1740_v13, %v1738_v12  ;;  %v1769_v12 = vld [vmem:[#allocation7 + $0x6a0] sm:$0xff]  ;;  %v1771_v13 = vld [vmem:[#allocation7 + $0x6b0] sm:$0xff] }
 0x42e   :  { %2932 = vmatpush1.bf16.msra.mxu0 %v2931_v19  ;;  %v2967_v19 = vpack.c.bf16 %v1739_v17, %v1737_v16  ;;  %v2999_v16 = vpack.c.bf16 %v1771_v13, %v1769_v12  ;;  %v1252_v13 = vrot.slane %v3352_v39, %v373_v41 }
 0x42f   :  { %2934 = vmatprep.subr.bf16.mxu0 %v2933_v20  ;;  %v2969_v20 = vpack.c.bf16 %v1744_v18, %v1742_v22  ;;  %v1773_v22 = vld [vmem:[#allocation7 + $0x6c0] sm:$0xff]  ;;  %v1775_v18 = vld [vmem:[#allocation7 + $0x6d0] sm:$0xff] }
 0x432   :  { %2936 = vmatpush1.bf16.msra.mxu0 %v2935_v26  ;;  %v2971_v26 = vpack.c.bf16 %v1743_v23, %v1741_v21  ;;  %v3003_v21 = vpack.c.bf16 %v1775_v18, %v1773_v22  ;;  %v1545_v22 = vadd.f32 %v3365_v52, %v1252_v13 }
 0x433   :  { %2938 = vmatprep.subr.bf16.mxu0 %v2937_v27  ;;  %v1244_v27 = vrot.slane %v3352_v39, %v365_v43  ;;  %v1547_v43 = vadd.f32 %v3369_v56, %v1256_v34  ;;  %v1759_v56 = vld [vmem:[#allocation7 + $0x650] sm:$0xff] }
 0x434   :  { %v2987_v3 = vpack.c.bf16 %v1759_v56, %v1757_v0  ;;  %v1783_v34 = vld [vmem:[#allocation7 + $0x710] sm:$0xff]  ;;  %v3023_v0 = vpack.c.bf16 %v1795_v62, %v1793_v61  ;;  %v1555_v18 = vmax.f32 %v1545_v22, 0.0 }
 0x435   :  { %v1474_v38 = vadd.f32 %v3363_v51, %v1244_v27  ;;  %v1784_v27 = vld [vmem:[#allocation7 + $0x718] sm:$0xff] }
 0x436   :  { %2940 = vmatpush1.bf16.msra.mxu0 %v2939_v35  ;;  %v1750_v35 = vld [vmem:[#allocation7 + $0x608] sm:$0xff] }
 0x437   :  { %2942 = vmatprep.subr.bf16.mxu0 %v2941_v36  ;;  %v1752_v36 = vld [vmem:[#allocation7 + $0x618] sm:$0xff]  ;;  %v1553_v58 = vmax.f32 %v1474_v38, 0.0 }
 0x438   :  { %v2977_v42 = vpack.c.bf16 %v1752_v36, %v1750_v35  ;;  %v1786_v35 = vld [vmem:[#allocation7 + $0x728] sm:$0xff]  ;;  %v1788_v36 = vld [vmem:[#allocation7 + $0x738] sm:$0xff] }
 0x439   :  { %v3013_v38 = vpack.c.bf16 %v1788_v36, %v1786_v35 }
 0x43a   :  { %2944 = vmatpush1.bf16.msra.mxu0 %v2943_v46  ;;  %v1751_v46 = vld [vmem:[#allocation7 + $0x610] sm:$0xff] }
 0x43b   :  { %2946 = vmatprep.subr.bf16.mxu0 %v2945_v47  ;;  %v1754_v47 = vld [vmem:[#allocation7 + $0x628] sm:$0xff]  ;;  %v2979_v57 = vpack.c.bf16 %v1751_v46, %v1749_v45  ;;  %v1787_v45 = vld [vmem:[#allocation7 + $0x730] sm:$0xff] }
 0x43c   :  { %v2981_v59 = vpack.c.bf16 %v1756_v53, %v1754_v47  ;;  %v1790_v46 = vld [vmem:[#allocation7 + $0x748] sm:$0xff] }
 0x43e   :  { %2948 = vmatpush1.bf16.msra.mxu0 %v2947_v60  ;;  %v1755_v60 = vld [vmem:[#allocation7 + $0x630] sm:$0xff] }
 0x43f   :  { %2950 = vmatprep.subr.bf16.mxu0 %v2949_v48  ;;  %v1556_v48 = vmax.f32 %v1547_v43, 0.0  ;;  %v2983_v51 = vpack.c.bf16 %v1755_v60, %v1753_v55  ;;  %v1792_v43 = vld [vmem:[#allocation7 + $0x758] sm:$0xff] }
 0x440   :  { %v3017_v53 = vpack.c.bf16 %v1792_v43, %v1790_v46  ;;  %v1796_v55 = vld [vmem:[#allocation7 + $0x778] sm:$0xff] }
 0x442   :  { %2952 = vmatpush1.bf16.msra.mxu0 %v2951_v1  ;;  %v1762_v1 = vld [vmem:[#allocation7 + $0x668] sm:$0xff] }
 0x443   :  { %2954 = vmatprep.subr.bf16.mxu0 %v2953_v44  ;;  %v1764_v44 = vld [vmem:[#allocation7 + $0x678] sm:$0xff] }
 0x444   :  { %v2989_v2 = vpack.c.bf16 %v1764_v44, %v1762_v1  ;;  %v1797_v1 = vld [vmem:[#allocation7 + $0x780] sm:$0xff]  ;;  %v1799_v44 = vld [vmem:[#allocation7 + $0x790] sm:$0xff] }
 0x445   :  { %v3027_v49 = vpack.c.bf16 %v1799_v44, %v1797_v1 }
 0x446   :  { %2956 = vmatpush1.bf16.msra.mxu0 %v2955_v50  ;;  %v1766_v50 = vld [vmem:[#allocation7 + $0x688] sm:$0xff] }
 0x447   :  { %2958 = vmatprep.subr.bf16.mxu0 %v2957_v5  ;;  %v1768_v5 = vld [vmem:[#allocation7 + $0x698] sm:$0xff] }
 0x448   :  { %v2993_v54 = vpack.c.bf16 %v1768_v5, %v1766_v50  ;;  %v1801_v50 = vld [vmem:[#allocation7 + $0x7a0] sm:$0xff]  ;;  %v1803_v5 = vld [vmem:[#allocation7 + $0x7b0] sm:$0xff] }
 0x449   :  { %v3031_v7 = vpack.c.bf16 %v1803_v5, %v1801_v50 }
 0x44a   :  { %2960 = vmatpush1.bf16.msra.mxu0 %v2959_v9  ;;  %v1770_v9 = vld [vmem:[#allocation7 + $0x6a8] sm:$0xff] }
 0x44b   :  { %2962 = vmatprep.subr.bf16.mxu0 %v2961_v31  ;;  %v1772_v31 = vld [vmem:[#allocation7 + $0x6b8] sm:$0xff] }
 0x44c   :  { %v2997_v11 = vpack.c.bf16 %v1772_v31, %v1770_v9  ;;  %v1805_v9 = vld [vmem:[#allocation7 + $0x7c0] sm:$0xff]  ;;  %v1807_v31 = vld [vmem:[#allocation7 + $0x7d0] sm:$0xff] }
 0x44d   :  { %v3035_v12 = vpack.c.bf16 %v1807_v31, %v1805_v9 }
 0x44e   :  { %2964 = vmatpush1.bf16.msra.mxu0 %v2963_v14  ;;  %v1774_v14 = vld [vmem:[#allocation7 + $0x6c8] sm:$0xff] }
 0x44f   :  { %2966 = vmatprep.subr.bf16.mxu0 %v2965_v15  ;;  %v1776_v15 = vld [vmem:[#allocation7 + $0x6d8] sm:$0xff] }
 0x450   :  { %v3001_v17 = vpack.c.bf16 %v1776_v15, %v1774_v14  ;;  %v1809_v15 = vld [vmem:[#allocation7 + $0x7e0] sm:$0xff] }
 0x452   :  { %2968 = vmatpush1.bf16.msra.mxu0 %v2967_v19  ;;  %v1778_v19 = vld [vmem:[#allocation7 + $0x6e8] sm:$0xff] }
 0x453   :  { %2970 = vmatprep.subr.bf16.mxu0 %v2969_v20  ;;  %v1780_v20 = vld [vmem:[#allocation7 + $0x6f8] sm:$0xff] }
 0x454   :  { %v3005_v23 = vpack.c.bf16 %v1780_v20, %v1778_v19  ;;  %v1813_v19 = vld [vmem:[%s3410_s8] sm:$0x3] }
 0x455   :  { %v1818_v24 = vrot.slane %v1813_v19, %v3299_v30  ;;  %v1822_v41 = vrot.slane %v1813_v19, %v3307_v32 }
 0x456   :  { %2972 = vmatpush1.bf16.msra.mxu0 %v2971_v26  ;;  %v1782_v26 = vld [vmem:[#allocation7 + $0x708] sm:$0xff] }
 0x457   :  { %2974 = vmatprep.subr.bf16.mxu0 %v2973_v28  ;;  %v3007_v28 = vpack.c.bf16 %v1779_v25, %v1777_v40  ;;  %v3009_v29 = vpack.c.bf16 %v1784_v27, %v1782_v26 }
 0x45a   :  { %2976 = vmatpush1.bf16.msra.mxu0 %v2975_v37  ;;  %v3011_v37 = vpack.c.bf16 %v1783_v34, %v1781_v33 }
 0x45b   :  { %2978 = vmatprep.subr.bf16.mxu0 %v2977_v42  ;;  %v1785_v42 = vld [vmem:[#allocation7 + $0x720] sm:$0xff] }
 0x45c   :  { %v3015_v47 = vpack.c.bf16 %v1787_v45, %v1785_v42 }
 0x45d   :  { %2032 = vmatmul.mubr.f32.vlgmr.msra.gmra.mrb[8].mxu0 %v1553_v58  ;;  %v1791_v58 = vld [vmem:[#allocation7 + $0x750] sm:$0xff] }
 0x45e   :  { %2980 = vmatpush1.bf16.msra.mxu0 %v2979_v57  ;;  %2102 = vmatprep.mubr.f32.mxu0 %v1556_v48  ;;  %v1789_v57 = vld [vmem:[#allocation7 + $0x740] sm:$0xff] }
 0x45f   :  { %2982 = vmatprep.subr.bf16.mxu0 %v2981_v59  ;;  %v1794_v59 = vld [vmem:[#allocation7 + $0x768] sm:$0xff]  ;;  %v3019_v60 = vpack.c.bf16 %v1791_v58, %v1789_v57 }
 0x460   :  { %v3021_v48 = vpack.c.bf16 %v1796_v55, %v1794_v59 }
 0x462   :  { %2984 = vmatpush1.bf16.msra.mxu0 %v2983_v51  ;;  %v1798_v51 = vld [vmem:[#allocation7 + $0x788] sm:$0xff] }
 0x463   :  { %2986 = vmatprep.subr.bf16.mxu0 %v2985_v63  ;;  %v1800_v63 = vld [vmem:[#allocation7 + $0x798] sm:$0xff] }
 0x464   :  { %v3025_v56 = vpack.c.bf16 %v1800_v63, %v1798_v51 }
 0x466   :  { %2988 = vmatpush1.bf16.msra.mxu0 %v2987_v3  ;;  %v1802_v3 = vld [vmem:[#allocation7 + $0x7a8] sm:$0xff] }
 0x467   :  { %2990 = vmatprep.subr.bf16.mxu0 %v2989_v2  ;;  %v1804_v2 = vld [vmem:[#allocation7 + $0x7b8] sm:$0xff] }
 0x468   :  { %v3029_v4 = vpack.c.bf16 %v1804_v2, %v1802_v3 }
 0x46a   :  { %2992 = vmatpush1.bf16.msra.mxu0 %v2991_v6  ;;  %v1806_v6 = vld [vmem:[#allocation7 + $0x7c8] sm:$0xff] }
 0x46b   :  { %2994 = vmatprep.subr.bf16.mxu0 %v2993_v54  ;;  %v1808_v54 = vld [vmem:[#allocation7 + $0x7d8] sm:$0xff] }
 0x46c   :  { %v3033_v8 = vpack.c.bf16 %v1808_v54, %v1806_v6 }
 0x46e   :  { %2996 = vmatpush1.bf16.msra.mxu0 %v2995_v10  ;;  %v1810_v10 = vld [vmem:[#allocation7 + $0x7e8] sm:$0xff] }
 0x46f   :  { %2998 = vmatprep.subr.bf16.mxu0 %v2997_v11  ;;  %v1812_v11 = vld [vmem:[#allocation7 + $0x7f8] sm:$0xff] }
 0x470   :  { %v3037_v14 = vpack.c.bf16 %v1812_v11, %v1810_v10 }
 0x472   :  { %3000 = vmatpush1.bf16.msra.mxu0 %v2999_v16  ;;  %v1811_v16 = vld [vmem:[#allocation7 + $0x7f0] sm:$0xff] }
 0x473   :  { %3002 = vmatprep.subr.bf16.mxu0 %v3001_v17  ;;  %v3039_v17 = vpack.c.bf16 %v1811_v16, %v1809_v15 }
 0x476   :  { %3004 = vmatpush1.bf16.msra.mxu0 %v3003_v21 }
 0x477   :  { %3006 = vmatprep.subr.bf16.mxu0 %v3005_v23 }
 0x47a   :  { %3008 = vmatpush1.bf16.msra.mxu0 %v3007_v28 }
 0x47b   :  { %3010 = vmatprep.subr.bf16.mxu0 %v3009_v29 }
 0x47e   :  { %3012 = vmatpush1.bf16.msra.mxu0 %v3011_v37 }
 0x47f   :  { %3014 = vmatprep.subr.bf16.mxu0 %v3013_v38 }
 0x482   :  { %3016 = vmatpush1.bf16.msra.mxu0 %v3015_v47 }
 0x483   :  { %3018 = vmatprep.subr.bf16.mxu0 %v3017_v53 }
 0x486   :  { %3020 = vmatpush1.bf16.msra.mxu0 %v3019_v60 }
 0x487   :  { %3022 = vmatprep.subr.bf16.mxu0 %v3021_v48 }
 0x48a   :  { %3024 = vmatpush1.bf16.msra.mxu0 %v3023_v0 }
 0x48b   :  { %3026 = vmatprep.subr.bf16.mxu0 %v3025_v56 }
 0x48e   :  { %3028 = vmatpush1.bf16.msra.mxu0 %v3027_v49 }
 0x48f   :  { %3030 = vmatprep.subr.bf16.mxu0 %v3029_v4 }
 0x492   :  { %3032 = vmatpush1.bf16.msra.mxu0 %v3031_v7 }
 0x493   :  { %3034 = vmatprep.subr.bf16.mxu0 %v3033_v8 }
 0x496   :  { %3036 = vmatpush1.bf16.msra.mxu0 %v3035_v12 }
 0x497   :  { %3038 = vmatprep.subr.bf16.mxu0 %v3037_v14 }
 0x49a   :  { %3040 = vmatpush1.bf16.msra.mxu0 %v3039_v17 }
 0x49d   :  { %2103 = vmatmul.mubr.f32.vlgmr.msra.gmra.mrb[8].mxu0 %v1555_v18 }
 0x570   :  { %v2104_v39 = vpop.f32.mrb[8].mxu0 }
 0x571   :  { %v3041_v20 = vadd.f32 %v2104_v39, %v1818_v24  ;;  %v2106_v21 = vpop.f32.mrb[9].mxu0 }
 0x572   :  { %v3042_v23 = vadd.f32 %v2106_v21, %v1822_v41 }
 0x573   :  { %v2131_v40 = vmul.f32 -1.442695, %v3041_v20 }
 0x574   :  { %v2132_v25 = vmul.f32 -1.442695, %v3042_v23 }
 0x575   :  { %3060 = vpow2.f32 %v2131_v40 }
 0x576   :  { %3062 = vpow2.f32 %v2132_v25 }
 0x57f   :  { %v3061_v52 = vpop.eup %3060 }
 0x580   :  { %v3063_v26 = vpop.eup %3062  ;;  %v2115_v27 = vadd.f32 1.0, %v3061_v52 }
 0x581   :  { %v2116_v28 = vadd.f32 1.0, %v3063_v26 }
 0x582   :  { %3064 = vrcp.f32 %v2115_v27 }
 0x583   :  { %3066 = vrcp.f32 %v2116_v28 }
 0x58c   :  { %v3065_v29 = vpop.eup %3064 }
 0x58d   :  { %v3067_v33 = vpop.eup %3066  ;;  %2121 = vst [vmem:[%s3411_s9] sm:$0xff] %v3065_v29 }
 0x58e   :  { %2122 = vst [vmem:[%s3411_s9 + $0x8] sm:$0xff] %v3067_v33 }
 0x58f   :  { %2127 = vsyncpa [#allocation3], 1 }
 0x590   :  { %2128 = vsyncpa [#allocation5], 1 }
 0x591   :  { %2129 = vsyncpa [#allocation8], 1 }

</bundles_post_ra>
